<compile_context>
chip_gen: v7x
topology: tpu7x:2x2x1
jax: 0.10.0
libtpu: 0.0.40
codegen_flags: <defaults>
</compile_context>

<pallas_src>
import numpy as np
import jax
import jax.numpy as jnp
from jax.experimental import pallas as pl
from jax.experimental.pallas import tpu as pltpu

ACTIVATION = "ReLU"        # one of 'ReLU', 'LeakyReLU', 'SELU' (module ctor arg)
LANES = 128                # final logits are padded to this lane width
MXU_DTYPE = jnp.bfloat16   # matmul operand dtype (f32 accumulation); set
                           # jnp.float32 for closer parity with PyTorch f32.
_EPS = 1e-5                # BatchNorm eps
_SPATIAL = (16, 8, 4, 2)   # per-stage input H (=W); four MaxPool2d(2): 16 -> 1


def _apply_activation(x):
    # All three activations map 0 -> 0, so the zero border rows/lanes that the
    # selector GEMMs re-insert stay exactly zero through the whole network.
    if ACTIVATION == "ReLU":
        return jnp.maximum(x, 0.0)
    elif ACTIVATION == "LeakyReLU":
        return jnp.where(x > 0, x, 0.01 * x)
    else:  # SELU
        alpha = 1.6732632423543772
        scale = 1.0507009873554805
        return scale * jnp.where(x > 0, x, alpha * (jnp.exp(x) - 1.0))


# --------------------------- constant matrix builders --------------------------- #

def _pack_conv_layer(wconv, bconv, gamma, beta, rmean, rvar, H):
    """Pack Conv2d(3x3,pad=1)+BatchNorm2d(eval) for the (n,y)-rows x (x,cin)-lanes
    layout.  Returns Wdy: (3, (H+2)*Cin, H*Cout) banded matrices (BN scale folded
    into the columns) and shift_row: (1, H*Cout)."""
    Cout, Cin, _, _ = wconv.shape
    Wp = H + 2
    scale = gamma / np.sqrt(rvar + _EPS)
    shift = beta + (bconv - rmean) * scale            # conv bias folded in too
    Wdy = np.zeros((3, Wp * Cin, H * Cout), np.float32)
    for dy in range(3):
        for xo in range(H):                 # output interior column (padded x = xo+1)
            for dx in range(3):
                xi = xo + dx                # input padded column
                Wdy[dy, xi * Cin:(xi + 1) * Cin, xo * Cout:(xo + 1) * Cout] = (
                    wconv[:, :, dy, dx].T * scale[None, :])
    shift_row = np.tile(shift.astype(np.float32), H)[None, :]   # lane xo*Cout+c -> shift[c]
    return Wdy, shift_row


def _build_pool_selectors(N, H, Cout, last):
    """Constant 0/1 matrices turning the conv/BN output (rows = conv-row index i,
    lanes = xo*Cout + c with padded x = xo+1) into the next stage's input layout.

    Conv row i corresponds to padded center row g = i+1 (image n = g//Hp, y = g%Hp).
    The kernel builds zv[i] = max(z[i], z[i+1]) (vertical 2-max), so zv row
    i = n*Hp + 2*yo holds the vertical max for pooled output row yo of image n.
    P[0]/P[1] pick the even/odd conv columns (2xo, 2xo+1) and drop them at the
    next layer's lane (xo+1)*Cout + c (zero x-border re-inserted for free); the
    kernel takes the elementwise max of the two results -> full 2x2 max pool.
    S then selects rows i = n*Hp + 2*yo into the next layer's zero-bordered
    (n, y) row layout.  Conv rows contaminated across image boundaries and all
    border rows/lanes correspond exactly to all-zero rows/columns of S and P,
    so they are never observed downstream."""
    Hp, Ho, W = H + 2, H // 2, H
    Mr = N * Hp - 2            # conv rows
    Mv = Mr - 1                # vertically-maxed rows
    Lin = W * Cout
    if last:
        assert Ho == 1, "last stage must reduce spatial to 1x1"
        Rout, Lout = N, Cout
    else:
        Rout, Lout = N * (Ho + 2), (Ho + 2) * Cout
    P = np.zeros((2, Lin, Lout), np.float32)
    S = np.zeros((Rout, Mv), np.float32)
    for xo in range(Ho):
        for c in range(Cout):
            lo = c if last else (xo + 1) * Cout + c
            P[0, (2 * xo) * Cout + c, lo] = 1.0
            P[1, (2 * xo + 1) * Cout + c, lo] = 1.0
    for n in range(N):
        for yo in range(Ho):
            i = n * Hp + 2 * yo
            # Tie S to the kernel's zv construction: both pooled rows must exist
            # and both must be interior rows of the same image n.
            assert 0 <= i < Mv and i + 1 < Mr
            assert (i + 1) // Hp == n and (i + 2) // Hp == n
            q = n if last else n * (Ho + 2) + (yo + 1)
            S[q, i] = 1.0
    return P, S


# ----------------------------------- kernel ----------------------------------- #

def _net_kernel(a_ref,
                w1, b1, p1, r1,
                w2, b2, p2, r2,
                w3, b3, p3, r3,
                w4, b4, p4, r4,
                fw1, fb1, fw2, fb2, fw3, fb3,
                o_ref):

    def conv_bn_pool_act(A, w_ref, shift_ref, p_ref, s_ref):
        # A: (N*Hp, Wp*Cin) f32, rows = (n, y) over the zero-bordered image,
        # lanes = (x, cin).  Conv = 3 banded GEMMs (one per kernel row dy);
        # real contraction K = Wp*Cin <= 64 -> one MXU K-pass each.
        Mr = A.shape[0] - 2
        conv = (jnp.dot(A[0:Mr, :].astype(MXU_DTYPE), w_ref[0],
                        preferred_element_type=jnp.float32)
                + jnp.dot(A[1:Mr + 1, :].astype(MXU_DTYPE), w_ref[1],
                          preferred_element_type=jnp.float32)
                + jnp.dot(A[2:Mr + 2, :].astype(MXU_DTYPE), w_ref[2],
                          preferred_element_type=jnp.float32))
        z = conv + shift_ref[...]                       # BN (scale folded in weights)
        # Vertical 2-max: zv[i] = max(z[i], z[i+1]).  _build_pool_selectors'
        # row formula (i = n*Hp + 2*yo) relies on exactly this construction.
        zv = jnp.maximum(z[:Mr - 1, :], z[1:Mr, :]).astype(MXU_DTYPE)
        # Horizontal max + stride-2 subsample + zero x-border via two 0/1
        # lane-selector GEMMs (bf16, exact).
        hpool = jnp.maximum(
            jnp.dot(zv, p_ref[0], preferred_element_type=jnp.float32),
            jnp.dot(zv, p_ref[1], preferred_element_type=jnp.float32))
        act = _apply_activation(hpool).astype(MXU_DTYPE)
        # Row selection + zero row-border via a 0/1 row-selector GEMM (bf16, exact).
        return jnp.dot(s_ref[...], act, preferred_element_type=jnp.float32)

    x = a_ref[...]
    for (w, b, p, s) in ((w1, b1, p1, r1), (w2, b2, p2, r2),
                         (w3, b3, p3, r3), (w4, b4, p4, r4)):
        x = conv_bn_pool_act(x, w, b, p, s)

    # Fused MLP head.  Flatten is the identity: spatial is 1x1 and channels sit
    # on lanes 0..c4-1.  Dropout == identity (eval mode).
    h = _apply_activation(
        jnp.dot(x.astype(MXU_DTYPE), fw1[...],
                preferred_element_type=jnp.float32) + fb1[...])
    h = _apply_activation(
        jnp.dot(h.astype(MXU_DTYPE), fw2[...],
                preferred_element_type=jnp.float32) + fb2[...])
    o_ref[...] = (jnp.dot(h.astype(MXU_DTYPE), fw3[...],
                          preferred_element_type=jnp.float32)
                  + fb3[...]).astype(o_ref.dtype)


_VMEM_SPEC = pl.BlockSpec(memory_space=pltpu.MemorySpace.VMEM)


# --------------------------------- JAX wrapper --------------------------------- #

def net_forward(x_nchw, conv_params, fc_params):
    """x_nchw: (N, 1, 16, 16) — four MaxPool2d(2) reduce 16x16 to 1x1."""
    N, Cin, H, W = x_nchw.shape
    assert Cin == 1 and H == W == _SPATIAL[0]

    # Input prep: NCHW -> rows (n, y) x lanes (x, cin) with zero spatial border.
    x = jnp.transpose(x_nchw, (0, 2, 3, 1))
    x = jnp.pad(x, ((0, 0), (1, 1), (1, 1), (0, 0)))
    a1 = x.reshape(N * (H + 2), (W + 2) * Cin).astype(jnp.float32)

    args = [a1]
    flops = 0
    for li, ((wdy, shift_row), Hl) in enumerate(zip(conv_params, _SPATIAL)):
        cout = wdy.shape[2] // Hl
        P, S = _build_pool_selectors(N, Hl, cout, last=(li == 3))
        args += [wdy, shift_row, jnp.asarray(P, MXU_DTYPE), jnp.asarray(S, MXU_DTYPE)]
        Mr = N * (Hl + 2) - 2
        flops += 2 * Mr * (3 * wdy.shape[1]) * wdy.shape[2]       # 3 banded conv GEMMs
        flops += 2 * 2 * (Mr - 1) * P.shape[1] * P.shape[2]       # 2 pooling lane-select GEMMs
        flops += 2 * S.shape[0] * S.shape[1] * P.shape[2]         # 1 row-select GEMM
    args += list(fc_params)
    for i in (0, 2, 4):
        flops += 2 * N * fc_params[i].shape[0] * fc_params[i].shape[1]
    bytes_accessed = sum(int(np.prod(a.shape)) * a.dtype.itemsize for a in args) + N * LANES * 4

    out = pl.pallas_call(
        _net_kernel,
        out_shape=jax.ShapeDtypeStruct((N, LANES), jnp.float32),   # lane-dense store
        in_specs=[_VMEM_SPEC] * len(args),
        out_specs=_VMEM_SPEC,
        cost_estimate=pl.CostEstimate(flops=int(flops), transcendentals=0,
                                      bytes_accessed=int(bytes_accessed)),
    )(*args)
    return out[:, :10]   # slice padded lanes back to the 10 real classes


# ------------------------------ parameters & reference ------------------------------ #

def init_raw_params(key, c1, c2, c3, c4, fc1, fc2):
    """Deterministic PyTorch-layout parameters (OIHW conv, (out,in) Linear)."""
    keys = iter(jax.random.split(key, 32))
    conv_raw = []
    for cin, cout in [(1, c1), (c1, c2), (c2, c3), (c3, c4)]:
        w = 0.1 * jax.random.normal(next(keys), (cout, cin, 3, 3), jnp.float32)
        b = 0.1 * jax.random.normal(next(keys), (cout,), jnp.float32)
        gamma = 1.0 + 0.1 * jax.random.normal(next(keys), (cout,), jnp.float32)
        beta = 0.1 * jax.random.normal(next(keys), (cout,), jnp.float32)
        rmean = 0.1 * jax.random.normal(next(keys), (cout,), jnp.float32)
        rvar = jax.random.uniform(next(keys), (cout,), jnp.float32, 0.5, 1.5)
        conv_raw.append((w, b, gamma, beta, rmean, rvar))
    fc_raw = []
    for fin, fout in [(c4, fc1), (fc1, fc2), (fc2, 10)]:
        w = 0.1 * jax.random.normal(next(keys), (fout, fin), jnp.float32)
        b = 0.1 * jax.random.normal(next(keys), (fout,), jnp.float32)
        fc_raw.append((w, b))
    return conv_raw, fc_raw


def pack_params(raw):
    """Kernel-format parameters: banded conv weights (BN folded), shifts, FC mats."""
    conv_raw, fc_raw = raw
    conv_packed = []
    for (w, b, gamma, beta, rmean, rvar), H in zip(conv_raw, _SPATIAL):
        Wdy, shift_row = _pack_conv_layer(np.asarray(w), np.asarray(b),
                                          np.asarray(gamma), np.asarray(beta),
                                          np.asarray(rmean), np.asarray(rvar), H)
        conv_packed.append((jnp.asarray(Wdy, MXU_DTYPE),
                            jnp.asarray(shift_row, jnp.float32)))
    fc_packed = []
    for li, (w, b) in enumerate(fc_raw):
        w = np.asarray(w); b = np.asarray(b)
        fout, fin = w.shape
        if li == 2:  # final Linear: pad the 10 logits to 128 lanes (lane-dense store)
            wp = np.zeros((fin, LANES), np.float32); wp[:, :fout] = w.T
            bp = np.zeros((1, LANES), np.float32); bp[0, :fout] = b
        else:
            wp = w.T.astype(np.float32); bp = b[None, :].astype(np.float32)
        fc_packed.extend([jnp.asarray(wp, MXU_DTYPE), jnp.asarray(bp, jnp.float32)])
    return conv_packed, tuple(fc_packed)


def reference_forward(x, raw):
    """Pure-JAX eval-mode forward of the PyTorch module (tolerance check)."""
    conv_raw, fc_raw = raw
    h = x
    for (w, b, gamma, beta, rmean, rvar) in conv_raw:
        h = jax.lax.conv_general_dilated(
            h, w, window_strides=(1, 1), padding=((1, 1), (1, 1)),
            dimension_numbers=("NCHW", "OIHW", "NCHW"),
            precision=jax.lax.Precision.HIGHEST)
        h = h + b[None, :, None, None]
        h = ((h - rmean[None, :, None, None])
             / jnp.sqrt(rvar[None, :, None, None] + _EPS)
             * gamma[None, :, None, None] + beta[None, :, None, None])
        n_, c_, hh, ww = h.shape
        h = h.reshape(n_, c_, hh // 2, 2, ww // 2, 2).max(axis=(3, 5))
        h = _apply_activation(h)
    h = h.reshape(h.shape[0], -1)
    for i, (w, b) in enumerate(fc_raw):
        h = jnp.dot(h, w.T, precision=jax.lax.Precision.HIGHEST) + b
        if i < 2:
            h = _apply_activation(h)   # Dropout == identity in eval mode
    return h


if __name__ == "__main__":
    key = jax.random.PRNGKey(0)
    kx, kp = jax.random.split(key)

    N = 2
    # PyTorch-style NCHW input; 16x16 so four MaxPool2d(2) reduce spatial to 1x1,
    # matching Linear(conv4_channels, FC1_channels) after Flatten.
    x = jax.random.normal(kx, (N, 1, 16, 16), jnp.float32)

    conv1_channels, conv2_channels, conv3_channels, conv4_channels = 4, 8, 16, 32
    FC1_channels, FC2_channels = 32, 16
    raw = init_raw_params(kp, conv1_channels, conv2_channels, conv3_channels,
                          conv4_channels, FC1_channels, FC2_channels)
    conv_packed, fc_packed = pack_params(raw)

    out = jax.jit(net_forward)(x, conv_packed, fc_packed)
    out = jax.block_until_ready(out)
    assert out.shape == (N, 10)
    assert bool(jnp.all(jnp.isfinite(out)))

    ref = reference_forward(x, raw)
    max_err = float(jnp.max(jnp.abs(out - ref)))
    assert max_err < 5e-2, f"kernel/reference mismatch: max abs err = {max_err}"

    print("KERNEL_OK")
</pallas_src>

<mosaic_0001>
module attributes {stable_mosaic.version = 11 : i64} {
  func.func @_net_kernel(%arg0: memref<36x18xf32, #tpu.memory_space<vmem>>, %arg1: memref<3x18x64xbf16, #tpu.memory_space<vmem>>, %arg2: memref<1x64xf32, #tpu.memory_space<vmem>>, %arg3: memref<2x64x40xbf16, #tpu.memory_space<vmem>>, %arg4: memref<20x33xbf16, #tpu.memory_space<vmem>>, %arg5: memref<3x40x64xbf16, #tpu.memory_space<vmem>>, %arg6: memref<1x64xf32, #tpu.memory_space<vmem>>, %arg7: memref<2x64x48xbf16, #tpu.memory_space<vmem>>, %arg8: memref<12x17xbf16, #tpu.memory_space<vmem>>, %arg9: memref<3x48x64xbf16, #tpu.memory_space<vmem>>, %arg10: memref<1x64xf32, #tpu.memory_space<vmem>>, %arg11: memref<2x64x64xbf16, #tpu.memory_space<vmem>>, %arg12: memref<8x9xbf16, #tpu.memory_space<vmem>>, %arg13: memref<3x64x64xbf16, #tpu.memory_space<vmem>>, %arg14: memref<1x64xf32, #tpu.memory_space<vmem>>, %arg15: memref<2x64x32xbf16, #tpu.memory_space<vmem>>, %arg16: memref<2x5xbf16, #tpu.memory_space<vmem>>, %arg17: memref<32x32xbf16, #tpu.memory_space<vmem>>, %arg18: memref<1x32xf32, #tpu.memory_space<vmem>>, %arg19: memref<32x16xbf16, #tpu.memory_space<vmem>>, %arg20: memref<1x16xf32, #tpu.memory_space<vmem>>, %arg21: memref<16x128xbf16, #tpu.memory_space<vmem>>, %arg22: memref<1x128xf32, #tpu.memory_space<vmem>>, %arg23: memref<2x128xf32, #tpu.memory_space<vmem>>) attributes {dimension_semantics = [], scalar_prefetch = 0 : i64, scratch_operands = 0 : i64, tpu.core_type = #tpu.core_type<tc>} {
    %c0 = arith.constant 0 : index
    %c0_0 = arith.constant 0 : index
    %0 = vector.load %arg0[%c0, %c0_0] : memref<36x18xf32, #tpu.memory_space<vmem>>, vector<36x18xf32>
    %1 = vector.extract_strided_slice %0 {offsets = [0, 0], sizes = [34, 18], strides = [1, 1]} : vector<36x18xf32> to vector<34x18xf32>
    %2 = arith.truncf %1 : vector<34x18xf32> to vector<34x18xbf16>
    %c0_1 = arith.constant 0 : index
    %c0_2 = arith.constant 0 : index
    %c0_3 = arith.constant 0 : index
    %3 = vector.load %arg1[%c0_1, %c0_2, %c0_3] : memref<3x18x64xbf16, #tpu.memory_space<vmem>>, vector<1x18x64xbf16>
    %4 = vector.shape_cast %3 : vector<1x18x64xbf16> to vector<18x64xbf16>
    %cst = arith.constant dense<0.000000e+00> : vector<34x64xf32>
    %5 = tpu.matmul %2, %4, %cst {dimension_numbers = #tpu.dot_dimension_numbers<[1], [0], [0], [1], [0, 0, 1, 1], [], []>} : vector<34x18xbf16>, vector<18x64xbf16>, vector<34x64xf32> -> vector<34x64xf32>
    %6 = vector.extract_strided_slice %0 {offsets = [1, 0], sizes = [34, 18], strides = [1, 1]} : vector<36x18xf32> to vector<34x18xf32>
    %7 = arith.truncf %6 : vector<34x18xf32> to vector<34x18xbf16>
    %c1 = arith.constant 1 : index
    %c0_4 = arith.constant 0 : index
    %c0_5 = arith.constant 0 : index
    %8 = vector.load %arg1[%c1, %c0_4, %c0_5] : memref<3x18x64xbf16, #tpu.memory_space<vmem>>, vector<1x18x64xbf16>
    %9 = vector.shape_cast %8 : vector<1x18x64xbf16> to vector<18x64xbf16>
    %cst_6 = arith.constant dense<0.000000e+00> : vector<34x64xf32>
    %10 = tpu.matmul %7, %9, %cst_6 {dimension_numbers = #tpu.dot_dimension_numbers<[1], [0], [0], [1], [0, 0, 1, 1], [], []>} : vector<34x18xbf16>, vector<18x64xbf16>, vector<34x64xf32> -> vector<34x64xf32>
    %11 = arith.addf %5, %10 : vector<34x64xf32>
    %12 = vector.extract_strided_slice %0 {offsets = [2, 0], sizes = [34, 18], strides = [1, 1]} : vector<36x18xf32> to vector<34x18xf32>
    %13 = arith.truncf %12 : vector<34x18xf32> to vector<34x18xbf16>
    %c2 = arith.constant 2 : index
    %c0_7 = arith.constant 0 : index
    %c0_8 = arith.constant 0 : index
    %14 = vector.load %arg1[%c2, %c0_7, %c0_8] : memref<3x18x64xbf16, #tpu.memory_space<vmem>>, vector<1x18x64xbf16>
    %15 = vector.shape_cast %14 : vector<1x18x64xbf16> to vector<18x64xbf16>
    %cst_9 = arith.constant dense<0.000000e+00> : vector<34x64xf32>
    %16 = tpu.matmul %13, %15, %cst_9 {dimension_numbers = #tpu.dot_dimension_numbers<[1], [0], [0], [1], [0, 0, 1, 1], [], []>} : vector<34x18xbf16>, vector<18x64xbf16>, vector<34x64xf32> -> vector<34x64xf32>
    %17 = arith.addf %11, %16 : vector<34x64xf32>
    %c0_10 = arith.constant 0 : index
    %c0_11 = arith.constant 0 : index
    %18 = vector.load %arg2[%c0_10, %c0_11] : memref<1x64xf32, #tpu.memory_space<vmem>>, vector<1x64xf32>
    %19 = vector.broadcast %18 : vector<1x64xf32> to vector<34x64xf32>
    %20 = arith.addf %17, %19 : vector<34x64xf32>
    %21 = vector.extract_strided_slice %20 {offsets = [0, 0], sizes = [33, 64], strides = [1, 1]} : vector<34x64xf32> to vector<33x64xf32>
    %22 = vector.extract_strided_slice %20 {offsets = [1, 0], sizes = [33, 64], strides = [1, 1]} : vector<34x64xf32> to vector<33x64xf32>
    %23 = arith.maximumf %21, %22 : vector<33x64xf32>
    %24 = arith.truncf %23 : vector<33x64xf32> to vector<33x64xbf16>
    %c0_12 = arith.constant 0 : index
    %c0_13 = arith.constant 0 : index
    %c0_14 = arith.constant 0 : index
    %25 = vector.load %arg3[%c0_12, %c0_13, %c0_14] : memref<2x64x40xbf16, #tpu.memory_space<vmem>>, vector<1x64x40xbf16>
    %26 = vector.shape_cast %25 : vector<1x64x40xbf16> to vector<64x40xbf16>
    %cst_15 = arith.constant dense<0.000000e+00> : vector<33x40xf32>
    %27 = tpu.matmul %24, %26, %cst_15 {dimension_numbers = #tpu.dot_dimension_numbers<[1], [0], [0], [1], [0, 0, 1, 1], [], []>} : vector<33x64xbf16>, vector<64x40xbf16>, vector<33x40xf32> -> vector<33x40xf32>
    %c1_16 = arith.constant 1 : index
    %c0_17 = arith.constant 0 : index
    %c0_18 = arith.constant 0 : index
    %28 = vector.load %arg3[%c1_16, %c0_17, %c0_18] : memref<2x64x40xbf16, #tpu.memory_space<vmem>>, vector<1x64x40xbf16>
    %29 = vector.shape_cast %28 : vector<1x64x40xbf16> to vector<64x40xbf16>
    %cst_19 = arith.constant dense<0.000000e+00> : vector<33x40xf32>
    %30 = tpu.matmul %24, %29, %cst_19 {dimension_numbers = #tpu.dot_dimension_numbers<[1], [0], [0], [1], [0, 0, 1, 1], [], []>} : vector<33x64xbf16>, vector<64x40xbf16>, vector<33x40xf32> -> vector<33x40xf32>
    %31 = arith.maximumf %27, %30 : vector<33x40xf32>
    %cst_20 = arith.constant 0.000000e+00 : f32
    %32 = vector.broadcast %cst_20 : f32 to vector<33x40xf32>
    %33 = arith.maximumf %31, %32 : vector<33x40xf32>
    %34 = arith.truncf %33 : vector<33x40xf32> to vector<33x40xbf16>
    %c0_21 = arith.constant 0 : index
    %c0_22 = arith.constant 0 : index
    %35 = vector.load %arg4[%c0_21, %c0_22] : memref<20x33xbf16, #tpu.memory_space<vmem>>, vector<20x33xbf16>
    %cst_23 = arith.constant dense<0.000000e+00> : vector<20x40xf32>
    %36 = tpu.matmul %35, %34, %cst_23 {dimension_numbers = #tpu.dot_dimension_numbers<[1], [0], [0], [1], [0, 0, 1, 1], [], []>} : vector<20x33xbf16>, vector<33x40xbf16>, vector<20x40xf32> -> vector<20x40xf32>
    %37 = vector.extract_strided_slice %36 {offsets = [0, 0], sizes = [18, 40], strides = [1, 1]} : vector<20x40xf32> to vector<18x40xf32>
    %38 = arith.truncf %37 : vector<18x40xf32> to vector<18x40xbf16>
    %c0_24 = arith.constant 0 : index
    %c0_25 = arith.constant 0 : index
    %c0_26 = arith.constant 0 : index
    %39 = vector.load %arg5[%c0_24, %c0_25, %c0_26] : memref<3x40x64xbf16, #tpu.memory_space<vmem>>, vector<1x40x64xbf16>
    %40 = vector.shape_cast %39 : vector<1x40x64xbf16> to vector<40x64xbf16>
    %cst_27 = arith.constant dense<0.000000e+00> : vector<18x64xf32>
    %41 = tpu.matmul %38, %40, %cst_27 {dimension_numbers = #tpu.dot_dimension_numbers<[1], [0], [0], [1], [0, 0, 1, 1], [], []>} : vector<18x40xbf16>, vector<40x64xbf16>, vector<18x64xf32> -> vector<18x64xf32>
    %42 = vector.extract_strided_slice %36 {offsets = [1, 0], sizes = [18, 40], strides = [1, 1]} : vector<20x40xf32> to vector<18x40xf32>
    %43 = arith.truncf %42 : vector<18x40xf32> to vector<18x40xbf16>
    %c1_28 = arith.constant 1 : index
    %c0_29 = arith.constant 0 : index
    %c0_30 = arith.constant 0 : index
    %44 = vector.load %arg5[%c1_28, %c0_29, %c0_30] : memref<3x40x64xbf16, #tpu.memory_space<vmem>>, vector<1x40x64xbf16>
    %45 = vector.shape_cast %44 : vector<1x40x64xbf16> to vector<40x64xbf16>
    %cst_31 = arith.constant dense<0.000000e+00> : vector<18x64xf32>
    %46 = tpu.matmul %43, %45, %cst_31 {dimension_numbers = #tpu.dot_dimension_numbers<[1], [0], [0], [1], [0, 0, 1, 1], [], []>} : vector<18x40xbf16>, vector<40x64xbf16>, vector<18x64xf32> -> vector<18x64xf32>
    %47 = arith.addf %41, %46 : vector<18x64xf32>
    %48 = vector.extract_strided_slice %36 {offsets = [2, 0], sizes = [18, 40], strides = [1, 1]} : vector<20x40xf32> to vector<18x40xf32>
    %49 = arith.truncf %48 : vector<18x40xf32> to vector<18x40xbf16>
    %c2_32 = arith.constant 2 : index
    %c0_33 = arith.constant 0 : index
    %c0_34 = arith.constant 0 : index
    %50 = vector.load %arg5[%c2_32, %c0_33, %c0_34] : memref<3x40x64xbf16, #tpu.memory_space<vmem>>, vector<1x40x64xbf16>
    %51 = vector.shape_cast %50 : vector<1x40x64xbf16> to vector<40x64xbf16>
    %cst_35 = arith.constant dense<0.000000e+00> : vector<18x64xf32>
    %52 = tpu.matmul %49, %51, %cst_35 {dimension_numbers = #tpu.dot_dimension_numbers<[1], [0], [0], [1], [0, 0, 1, 1], [], []>} : vector<18x40xbf16>, vector<40x64xbf16>, vector<18x64xf32> -> vector<18x64xf32>
    %53 = arith.addf %47, %52 : vector<18x64xf32>
    %c0_36 = arith.constant 0 : index
    %c0_37 = arith.constant 0 : index
    %54 = vector.load %arg6[%c0_36, %c0_37] : memref<1x64xf32, #tpu.memory_space<vmem>>, vector<1x64xf32>
    %55 = vector.broadcast %54 : vector<1x64xf32> to vector<18x64xf32>
    %56 = arith.addf %53, %55 : vector<18x64xf32>
    %57 = vector.extract_strided_slice %56 {offsets = [0, 0], sizes = [17, 64], strides = [1, 1]} : vector<18x64xf32> to vector<17x64xf32>
    %58 = vector.extract_strided_slice %56 {offsets = [1, 0], sizes = [17, 64], strides = [1, 1]} : vector<18x64xf32> to vector<17x64xf32>
    %59 = arith.maximumf %57, %58 : vector<17x64xf32>
    %60 = arith.truncf %59 : vector<17x64xf32> to vector<17x64xbf16>
    %c0_38 = arith.constant 0 : index
    %c0_39 = arith.constant 0 : index
    %c0_40 = arith.constant 0 : index
    %61 = vector.load %arg7[%c0_38, %c0_39, %c0_40] : memref<2x64x48xbf16, #tpu.memory_space<vmem>>, vector<1x64x48xbf16>
    %62 = vector.shape_cast %61 : vector<1x64x48xbf16> to vector<64x48xbf16>
    %cst_41 = arith.constant dense<0.000000e+00> : vector<17x48xf32>
    %63 = tpu.matmul %60, %62, %cst_41 {dimension_numbers = #tpu.dot_dimension_numbers<[1], [0], [0], [1], [0, 0, 1, 1], [], []>} : vector<17x64xbf16>, vector<64x48xbf16>, vector<17x48xf32> -> vector<17x48xf32>
    %c1_42 = arith.constant 1 : index
    %c0_43 = arith.constant 0 : index
    %c0_44 = arith.constant 0 : index
    %64 = vector.load %arg7[%c1_42, %c0_43, %c0_44] : memref<2x64x48xbf16, #tpu.memory_space<vmem>>, vector<1x64x48xbf16>
    %65 = vector.shape_cast %64 : vector<1x64x48xbf16> to vector<64x48xbf16>
    %cst_45 = arith.constant dense<0.000000e+00> : vector<17x48xf32>
    %66 = tpu.matmul %60, %65, %cst_45 {dimension_numbers = #tpu.dot_dimension_numbers<[1], [0], [0], [1], [0, 0, 1, 1], [], []>} : vector<17x64xbf16>, vector<64x48xbf16>, vector<17x48xf32> -> vector<17x48xf32>
    %67 = arith.maximumf %63, %66 : vector<17x48xf32>
    %cst_46 = arith.constant 0.000000e+00 : f32
    %68 = vector.broadcast %cst_46 : f32 to vector<17x48xf32>
    %69 = arith.maximumf %67, %68 : vector<17x48xf32>
    %70 = arith.truncf %69 : vector<17x48xf32> to vector<17x48xbf16>
    %c0_47 = arith.constant 0 : index
    %c0_48 = arith.constant 0 : index
    %71 = vector.load %arg8[%c0_47, %c0_48] : memref<12x17xbf16, #tpu.memory_space<vmem>>, vector<12x17xbf16>
    %cst_49 = arith.constant dense<0.000000e+00> : vector<12x48xf32>
    %72 = tpu.matmul %71, %70, %cst_49 {dimension_numbers = #tpu.dot_dimension_numbers<[1], [0], [0], [1], [0, 0, 1, 1], [], []>} : vector<12x17xbf16>, vector<17x48xbf16>, vector<12x48xf32> -> vector<12x48xf32>
    %73 = vector.extract_strided_slice %72 {offsets = [0, 0], sizes = [10, 48], strides = [1, 1]} : vector<12x48xf32> to vector<10x48xf32>
    %74 = arith.truncf %73 : vector<10x48xf32> to vector<10x48xbf16>
    %c0_50 = arith.constant 0 : index
    %c0_51 = arith.constant 0 : index
    %c0_52 = arith.constant 0 : index
    %75 = vector.load %arg9[%c0_50, %c0_51, %c0_52] : memref<3x48x64xbf16, #tpu.memory_space<vmem>>, vector<1x48x64xbf16>
    %76 = vector.shape_cast %75 : vector<1x48x64xbf16> to vector<48x64xbf16>
    %cst_53 = arith.constant dense<0.000000e+00> : vector<10x64xf32>
    %77 = tpu.matmul %74, %76, %cst_53 {dimension_numbers = #tpu.dot_dimension_numbers<[1], [0], [0], [1], [0, 0, 1, 1], [], []>} : vector<10x48xbf16>, vector<48x64xbf16>, vector<10x64xf32> -> vector<10x64xf32>
    %78 = vector.extract_strided_slice %72 {offsets = [1, 0], sizes = [10, 48], strides = [1, 1]} : vector<12x48xf32> to vector<10x48xf32>
    %79 = arith.truncf %78 : vector<10x48xf32> to vector<10x48xbf16>
    %c1_54 = arith.constant 1 : index
    %c0_55 = arith.constant 0 : index
    %c0_56 = arith.constant 0 : index
    %80 = vector.load %arg9[%c1_54, %c0_55, %c0_56] : memref<3x48x64xbf16, #tpu.memory_space<vmem>>, vector<1x48x64xbf16>
    %81 = vector.shape_cast %80 : vector<1x48x64xbf16> to vector<48x64xbf16>
    %cst_57 = arith.constant dense<0.000000e+00> : vector<10x64xf32>
    %82 = tpu.matmul %79, %81, %cst_57 {dimension_numbers = #tpu.dot_dimension_numbers<[1], [0], [0], [1], [0, 0, 1, 1], [], []>} : vector<10x48xbf16>, vector<48x64xbf16>, vector<10x64xf32> -> vector<10x64xf32>
    %83 = arith.addf %77, %82 : vector<10x64xf32>
    %84 = vector.extract_strided_slice %72 {offsets = [2, 0], sizes = [10, 48], strides = [1, 1]} : vector<12x48xf32> to vector<10x48xf32>
    %85 = arith.truncf %84 : vector<10x48xf32> to vector<10x48xbf16>
    %c2_58 = arith.constant 2 : index
    %c0_59 = arith.constant 0 : index
    %c0_60 = arith.constant 0 : index
    %86 = vector.load %arg9[%c2_58, %c0_59, %c0_60] : memref<3x48x64xbf16, #tpu.memory_space<vmem>>, vector<1x48x64xbf16>
    %87 = vector.shape_cast %86 : vector<1x48x64xbf16> to vector<48x64xbf16>
    %cst_61 = arith.constant dense<0.000000e+00> : vector<10x64xf32>
    %88 = tpu.matmul %85, %87, %cst_61 {dimension_numbers = #tpu.dot_dimension_numbers<[1], [0], [0], [1], [0, 0, 1, 1], [], []>} : vector<10x48xbf16>, vector<48x64xbf16>, vector<10x64xf32> -> vector<10x64xf32>
    %89 = arith.addf %83, %88 : vector<10x64xf32>
    %c0_62 = arith.constant 0 : index
    %c0_63 = arith.constant 0 : index
    %90 = vector.load %arg10[%c0_62, %c0_63] : memref<1x64xf32, #tpu.memory_space<vmem>>, vector<1x64xf32>
    %91 = vector.broadcast %90 : vector<1x64xf32> to vector<10x64xf32>
    %92 = arith.addf %89, %91 : vector<10x64xf32>
    %93 = vector.extract_strided_slice %92 {offsets = [0, 0], sizes = [9, 64], strides = [1, 1]} : vector<10x64xf32> to vector<9x64xf32>
    %94 = vector.extract_strided_slice %92 {offsets = [1, 0], sizes = [9, 64], strides = [1, 1]} : vector<10x64xf32> to vector<9x64xf32>
    %95 = arith.maximumf %93, %94 : vector<9x64xf32>
    %96 = arith.truncf %95 : vector<9x64xf32> to vector<9x64xbf16>
    %c0_64 = arith.constant 0 : index
    %c0_65 = arith.constant 0 : index
    %c0_66 = arith.constant 0 : index
    %97 = vector.load %arg11[%c0_64, %c0_65, %c0_66] : memref<2x64x64xbf16, #tpu.memory_space<vmem>>, vector<1x64x64xbf16>
    %98 = vector.shape_cast %97 : vector<1x64x64xbf16> to vector<64x64xbf16>
    %cst_67 = arith.constant dense<0.000000e+00> : vector<9x64xf32>
    %99 = tpu.matmul %96, %98, %cst_67 {dimension_numbers = #tpu.dot_dimension_numbers<[1], [0], [0], [1], [0, 0, 1, 1], [], []>} : vector<9x64xbf16>, vector<64x64xbf16>, vector<9x64xf32> -> vector<9x64xf32>
    %c1_68 = arith.constant 1 : index
    %c0_69 = arith.constant 0 : index
    %c0_70 = arith.constant 0 : index
    %100 = vector.load %arg11[%c1_68, %c0_69, %c0_70] : memref<2x64x64xbf16, #tpu.memory_space<vmem>>, vector<1x64x64xbf16>
    %101 = vector.shape_cast %100 : vector<1x64x64xbf16> to vector<64x64xbf16>
    %cst_71 = arith.constant dense<0.000000e+00> : vector<9x64xf32>
    %102 = tpu.matmul %96, %101, %cst_71 {dimension_numbers = #tpu.dot_dimension_numbers<[1], [0], [0], [1], [0, 0, 1, 1], [], []>} : vector<9x64xbf16>, vector<64x64xbf16>, vector<9x64xf32> -> vector<9x64xf32>
    %103 = arith.maximumf %99, %102 : vector<9x64xf32>
    %cst_72 = arith.constant 0.000000e+00 : f32
    %104 = vector.broadcast %cst_72 : f32 to vector<9x64xf32>
    %105 = arith.maximumf %103, %104 : vector<9x64xf32>
    %106 = arith.truncf %105 : vector<9x64xf32> to vector<9x64xbf16>
    %c0_73 = arith.constant 0 : index
    %c0_74 = arith.constant 0 : index
    %107 = vector.load %arg12[%c0_73, %c0_74] : memref<8x9xbf16, #tpu.memory_space<vmem>>, vector<8x9xbf16>
    %cst_75 = arith.constant dense<0.000000e+00> : vector<8x64xf32>
    %108 = tpu.matmul %107, %106, %cst_75 {dimension_numbers = #tpu.dot_dimension_numbers<[1], [0], [0], [1], [0, 0, 1, 1], [], []>} : vector<8x9xbf16>, vector<9x64xbf16>, vector<8x64xf32> -> vector<8x64xf32>
    %109 = vector.extract_strided_slice %108 {offsets = [0, 0], sizes = [6, 64], strides = [1, 1]} : vector<8x64xf32> to vector<6x64xf32>
    %110 = arith.truncf %109 : vector<6x64xf32> to vector<6x64xbf16>
    %c0_76 = arith.constant 0 : index
    %c0_77 = arith.constant 0 : index
    %c0_78 = arith.constant 0 : index
    %111 = vector.load %arg13[%c0_76, %c0_77, %c0_78] : memref<3x64x64xbf16, #tpu.memory_space<vmem>>, vector<1x64x64xbf16>
    %112 = vector.shape_cast %111 : vector<1x64x64xbf16> to vector<64x64xbf16>
    %cst_79 = arith.constant dense<0.000000e+00> : vector<6x64xf32>
    %113 = tpu.matmul %110, %112, %cst_79 {dimension_numbers = #tpu.dot_dimension_numbers<[1], [0], [0], [1], [0, 0, 1, 1], [], []>} : vector<6x64xbf16>, vector<64x64xbf16>, vector<6x64xf32> -> vector<6x64xf32>
    %114 = vector.extract_strided_slice %108 {offsets = [1, 0], sizes = [6, 64], strides = [1, 1]} : vector<8x64xf32> to vector<6x64xf32>
    %115 = arith.truncf %114 : vector<6x64xf32> to vector<6x64xbf16>
    %c1_80 = arith.constant 1 : index
    %c0_81 = arith.constant 0 : index
    %c0_82 = arith.constant 0 : index
    %116 = vector.load %arg13[%c1_80, %c0_81, %c0_82] : memref<3x64x64xbf16, #tpu.memory_space<vmem>>, vector<1x64x64xbf16>
    %117 = vector.shape_cast %116 : vector<1x64x64xbf16> to vector<64x64xbf16>
    %cst_83 = arith.constant dense<0.000000e+00> : vector<6x64xf32>
    %118 = tpu.matmul %115, %117, %cst_83 {dimension_numbers = #tpu.dot_dimension_numbers<[1], [0], [0], [1], [0, 0, 1, 1], [], []>} : vector<6x64xbf16>, vector<64x64xbf16>, vector<6x64xf32> -> vector<6x64xf32>
    %119 = arith.addf %113, %118 : vector<6x64xf32>
    %120 = vector.extract_strided_slice %108 {offsets = [2, 0], sizes = [6, 64], strides = [1, 1]} : vector<8x64xf32> to vector<6x64xf32>
    %121 = arith.truncf %120 : vector<6x64xf32> to vector<6x64xbf16>
    %c2_84 = arith.constant 2 : index
    %c0_85 = arith.constant 0 : index
    %c0_86 = arith.constant 0 : index
    %122 = vector.load %arg13[%c2_84, %c0_85, %c0_86] : memref<3x64x64xbf16, #tpu.memory_space<vmem>>, vector<1x64x64xbf16>
    %123 = vector.shape_cast %122 : vector<1x64x64xbf16> to vector<64x64xbf16>
    %cst_87 = arith.constant dense<0.000000e+00> : vector<6x64xf32>
    %124 = tpu.matmul %121, %123, %cst_87 {dimension_numbers = #tpu.dot_dimension_numbers<[1], [0], [0], [1], [0, 0, 1, 1], [], []>} : vector<6x64xbf16>, vector<64x64xbf16>, vector<6x64xf32> -> vector<6x64xf32>
    %125 = arith.addf %119, %124 : vector<6x64xf32>
    %c0_88 = arith.constant 0 : index
    %c0_89 = arith.constant 0 : index
    %126 = vector.load %arg14[%c0_88, %c0_89] : memref<1x64xf32, #tpu.memory_space<vmem>>, vector<1x64xf32>
    %127 = vector.broadcast %126 : vector<1x64xf32> to vector<6x64xf32>
    %128 = arith.addf %125, %127 : vector<6x64xf32>
    %129 = vector.extract_strided_slice %128 {offsets = [0, 0], sizes = [5, 64], strides = [1, 1]} : vector<6x64xf32> to vector<5x64xf32>
    %130 = vector.extract_strided_slice %128 {offsets = [1, 0], sizes = [5, 64], strides = [1, 1]} : vector<6x64xf32> to vector<5x64xf32>
    %131 = arith.maximumf %129, %130 : vector<5x64xf32>
    %132 = arith.truncf %131 : vector<5x64xf32> to vector<5x64xbf16>
    %c0_90 = arith.constant 0 : index
    %c0_91 = arith.constant 0 : index
    %c0_92 = arith.constant 0 : index
    %133 = vector.load %arg15[%c0_90, %c0_91, %c0_92] : memref<2x64x32xbf16, #tpu.memory_space<vmem>>, vector<1x64x32xbf16>
    %134 = vector.shape_cast %133 : vector<1x64x32xbf16> to vector<64x32xbf16>
    %cst_93 = arith.constant dense<0.000000e+00> : vector<5x32xf32>
    %135 = tpu.matmul %132, %134, %cst_93 {dimension_numbers = #tpu.dot_dimension_numbers<[1], [0], [0], [1], [0, 0, 1, 1], [], []>} : vector<5x64xbf16>, vector<64x32xbf16>, vector<5x32xf32> -> vector<5x32xf32>
    %c1_94 = arith.constant 1 : index
    %c0_95 = arith.constant 0 : index
    %c0_96 = arith.constant 0 : index
    %136 = vector.load %arg15[%c1_94, %c0_95, %c0_96] : memref<2x64x32xbf16, #tpu.memory_space<vmem>>, vector<1x64x32xbf16>
    %137 = vector.shape_cast %136 : vector<1x64x32xbf16> to vector<64x32xbf16>
    %cst_97 = arith.constant dense<0.000000e+00> : vector<5x32xf32>
    %138 = tpu.matmul %132, %137, %cst_97 {dimension_numbers = #tpu.dot_dimension_numbers<[1], [0], [0], [1], [0, 0, 1, 1], [], []>} : vector<5x64xbf16>, vector<64x32xbf16>, vector<5x32xf32> -> vector<5x32xf32>
    %139 = arith.maximumf %135, %138 : vector<5x32xf32>
    %cst_98 = arith.constant 0.000000e+00 : f32
    %140 = vector.broadcast %cst_98 : f32 to vector<5x32xf32>
    %141 = arith.maximumf %139, %140 : vector<5x32xf32>
    %142 = arith.truncf %141 : vector<5x32xf32> to vector<5x32xbf16>
    %c0_99 = arith.constant 0 : index
    %c0_100 = arith.constant 0 : index
    %143 = vector.load %arg16[%c0_99, %c0_100] : memref<2x5xbf16, #tpu.memory_space<vmem>>, vector<2x5xbf16>
    %cst_101 = arith.constant dense<0.000000e+00> : vector<2x32xf32>
    %144 = tpu.matmul %143, %142, %cst_101 {dimension_numbers = #tpu.dot_dimension_numbers<[1], [0], [0], [1], [0, 0, 1, 1], [], []>} : vector<2x5xbf16>, vector<5x32xbf16>, vector<2x32xf32> -> vector<2x32xf32>
    %145 = arith.truncf %144 : vector<2x32xf32> to vector<2x32xbf16>
    %c0_102 = arith.constant 0 : index
    %c0_103 = arith.constant 0 : index
    %146 = vector.load %arg17[%c0_102, %c0_103] : memref<32x32xbf16, #tpu.memory_space<vmem>>, vector<32x32xbf16>
    %cst_104 = arith.constant dense<0.000000e+00> : vector<2x32xf32>
    %147 = tpu.matmul %145, %146, %cst_104 {dimension_numbers = #tpu.dot_dimension_numbers<[1], [0], [0], [1], [0, 0, 1, 1], [], []>} : vector<2x32xbf16>, vector<32x32xbf16>, vector<2x32xf32> -> vector<2x32xf32>
    %c0_105 = arith.constant 0 : index
    %c0_106 = arith.constant 0 : index
    %148 = vector.load %arg18[%c0_105, %c0_106] : memref<1x32xf32, #tpu.memory_space<vmem>>, vector<1x32xf32>
    %149 = vector.broadcast %148 : vector<1x32xf32> to vector<2x32xf32>
    %150 = arith.addf %147, %149 : vector<2x32xf32>
    %cst_107 = arith.constant 0.000000e+00 : f32
    %151 = vector.broadcast %cst_107 : f32 to vector<2x32xf32>
    %152 = arith.maximumf %150, %151 : vector<2x32xf32>
    %153 = arith.truncf %152 : vector<2x32xf32> to vector<2x32xbf16>
    %c0_108 = arith.constant 0 : index
    %c0_109 = arith.constant 0 : index
    %154 = vector.load %arg19[%c0_108, %c0_109] : memref<32x16xbf16, #tpu.memory_space<vmem>>, vector<32x16xbf16>
    %cst_110 = arith.constant dense<0.000000e+00> : vector<2x16xf32>
    %155 = tpu.matmul %153, %154, %cst_110 {dimension_numbers = #tpu.dot_dimension_numbers<[1], [0], [0], [1], [0, 0, 1, 1], [], []>} : vector<2x32xbf16>, vector<32x16xbf16>, vector<2x16xf32> -> vector<2x16xf32>
    %c0_111 = arith.constant 0 : index
    %c0_112 = arith.constant 0 : index
    %156 = vector.load %arg20[%c0_111, %c0_112] : memref<1x16xf32, #tpu.memory_space<vmem>>, vector<1x16xf32>
    %157 = vector.broadcast %156 : vector<1x16xf32> to vector<2x16xf32>
    %158 = arith.addf %155, %157 : vector<2x16xf32>
    %cst_113 = arith.constant 0.000000e+00 : f32
    %159 = vector.broadcast %cst_113 : f32 to vector<2x16xf32>
    %160 = arith.maximumf %158, %159 : vector<2x16xf32>
    %161 = arith.truncf %160 : vector<2x16xf32> to vector<2x16xbf16>
    %c0_114 = arith.constant 0 : index
    %c0_115 = arith.constant 0 : index
    %162 = vector.load %arg21[%c0_114, %c0_115] : memref<16x128xbf16, #tpu.memory_space<vmem>>, vector<16x128xbf16>
    %cst_116 = arith.constant dense<0.000000e+00> : vector<2x128xf32>
    %163 = tpu.matmul %161, %162, %cst_116 {dimension_numbers = #tpu.dot_dimension_numbers<[1], [0], [0], [1], [0, 0, 1, 1], [], []>} : vector<2x16xbf16>, vector<16x128xbf16>, vector<2x128xf32> -> vector<2x128xf32>
    %c0_117 = arith.constant 0 : index
    %c0_118 = arith.constant 0 : index
    %164 = vector.load %arg22[%c0_117, %c0_118] : memref<1x128xf32, #tpu.memory_space<vmem>>, vector<1x128xf32>
    %165 = vector.broadcast %164 : vector<1x128xf32> to vector<2x128xf32>
    %166 = arith.addf %163, %165 : vector<2x128xf32>
    %c0_119 = arith.constant 0 : index
    %c0_120 = arith.constant 0 : index
    %167 = vector.load %arg23[%c0_119, %c0_120] : memref<2x128xf32, #tpu.memory_space<vmem>>, vector<2x128xf32>
    tpu.vector_store %arg23[%c0_119, %c0_120], %166 {strides = array<i32>} : memref<2x128xf32, #tpu.memory_space<vmem>>, vector<2x128xf32>,
    return
  }
}

</mosaic_0001>

<bundles_post_ra>
// kernel: net_forward.1
= control target key start
LH: loop header
LB: loop body
LE: loop exit
PB: predicated region body
PF: predicated region fallthrough
CT: control target
= control target key end

     0   :  { %s4346_s0 = inlined_call_operand.vmem [shape: f32[36,18], index: 0, kind: input, shape index: {}]   ;;  %s4347_s1 = inlined_call_operand.hbm [shape: bf16[3,18,64], index: 1, kind: input, shape index: {}]   ;;  %s4348_s2 = inlined_call_operand.hbm [shape: f32[1,64], index: 2, kind: input, shape index: {}]   ;;  %s4349_s3 = inlined_call_operand.vmem [shape: bf16[2,64,40], index: 3, kind: input, shape index: {}]   ;;  %s4350_s4 = inlined_call_operand.vmem [shape: bf16[20,33], index: 4, kind: input, shape index: {}]   ;;  %s4351_s5 = inlined_call_operand.hbm [shape: bf16[3,40,64], index: 5, kind: input, shape index: {}]   ;;  %s4352_s6 = inlined_call_operand.hbm [shape: f32[1,64], index: 6, kind: input, shape index: {}]   ;;  %s4353_s7 = inlined_call_operand.hbm [shape: bf16[2,64,48], index: 7, kind: input, shape index: {}]   ;;  %s4354_s8 = inlined_call_operand.hbm [shape: bf16[12,17], index: 8, kind: input, shape index: {}]   ;;  %s4355_s9 = inlined_call_operand.vmem [shape: bf16[3,48,64], index: 9, kind: input, shape index: {}]   ;;  %s4356_s10 = inlined_call_operand.hbm [shape: f32[1,64], index: 10, kind: input, shape index: {}]   ;;  %s4357_s11 = inlined_call_operand.hbm [shape: bf16[2,64,64], index: 11, kind: input, shape index: {}]   ;;  %s4358_s12 = inlined_call_operand.hbm [shape: bf16[8,9], index: 12, kind: input, shape index: {}]   ;;  %s4359_s13 = inlined_call_operand.vmem [shape: bf16[3,64,64], index: 13, kind: input, shape index: {}]   ;;  %s4360_s14 = inlined_call_operand.hbm [shape: f32[1,64], index: 14, kind: input, shape index: {}]   ;;  %s4361_s15 = inlined_call_operand.hbm [shape: bf16[2,64,32], index: 15, kind: input, shape index: {}]   ;;  %s4362_s16 = inlined_call_operand.hbm [shape: bf16[2,5], index: 16, kind: input, shape index: {}]   ;;  %s4363_s17 = inlined_call_operand.hbm [shape: bf16[32,32], index: 17, kind: input, shape index: {}]   ;;  %s4364_s18 = inlined_call_operand.hbm [shape: f32[1,32], index: 18, kind: input, shape index: {}]   ;;  %s4365_s19 = inlined_call_operand.vmem [shape: bf16[32,16], index: 19, kind: input, shape index: {}]   ;;  %s4366_s20 = inlined_call_operand.hbm [shape: f32[1,16], index: 20, kind: input, shape index: {}]   ;;  %s4367_s21 = inlined_call_operand.hbm [shape: bf16[16,128], index: 21, kind: input, shape index: {}]   ;;  %s4368_s22 = inlined_call_operand.hbm [shape: f32[1,128], index: 22, kind: input, shape index: {}]   ;;  %s4369_s23 = inlined_call_operand.hbm [shape: f32[2,128], index: 23, kind: output, shape index: {}]  }
   0x1   :  { %4378 = sst [smem:[#allocation40_spill]] %s4346_s0 }
   0x2   :  { %4379 = sst [smem:[#allocation41_spill]] %s4347_s1 }
   0x3   :  { %4380 = sst [smem:[#allocation42_spill]] %s4348_s2 }
   0x4   :  { %4381 = sst [smem:[#allocation43_spill]] %s4349_s3 }
   0x5   :  { %4382 = sst [smem:[#allocation44_spill]] %s4350_s4 }
   0x6   :  { %4383 = sst [smem:[#allocation45_spill]] %s4351_s5 }
   0x7   :  { %4384 = sst [smem:[#allocation46_spill]] %s4352_s6 }
   0x8   :  { %4385 = sst [smem:[#allocation47_spill]] %s4353_s7 }
   0x9   :  { %28 = vsyncpa [#allocation3], 0 }
   0xa   :  { %29 = vsyncpa [#allocation6], 0 }
   0xb   :  { %30 = vsyncpa [#allocation9], 0 }
   0xc   :  { %31 = vsyncpa [#allocation12], 0 }
   0xd   :  { %32 = vsyncpa [#allocation15], 0 }
   0xe   :  { %33 = vsyncpa [#allocation18], 0 }
   0xf   :  { %34 = vsyncpa [#allocation21], 0 }
  0x10   :  { %35 = vsyncpa [#allocation24], 0 }
  0x11   :  { %36 = vsyncpa [#allocation27], 0 }
  0x12   :  { %37 = vsyncpa [#allocation4], 0  ;;  %s3629_s4 = smov [#allocation5]   ;;  %s3630_s24 = smov [#allocation8]  }
  0x13   :  { %s58_s30 = sshll.u32 %s3629_s4, 4  ;;  %s84_s25 = sshll.u32 %s3630_s24, 4  ;;  %s59_s30 = int_to_ptr.vmem [resolvable:$true] %s58_s30  ;;  %s85_s25 = int_to_ptr.vmem [resolvable:$true] %s84_s25 }
  0x14   :  { %s4386_s26 = sld [smem:[#allocation42_spill]] }
  0x1a   :  { %s3213_s2 = scalar_lea.hbm %s4386_s26, 16 }
  0x1b   :  { %p3214_p0 = scmp.ne.s32.totalorder %s4386_s26, %s3213_s2  ;;  %p3217_p1 = scmp.lt.u32.totalorder %s3213_s2, %s4386_s26 }
  0x1d   :  { %p3219_p2 = pnand %p3217_p1, %p3214_p0 }
  0x1f   :  { %3222 = shalt.err (!%p3219_p2)
}
  0x20   :  { %s3223_s29 = scalar_lea.vmem %s59_s30, 16  ;;  %s3227_s3 = scalar_lea.vmem %s59_s30, 32 }
  0x21   :  { %p3224_p3 = scmp.ne.s32.totalorder %s59_s30, %s3223_s29  ;;  %p3228_p4 = scmp.lt.s32.totalorder %s59_s30, %s59_s30 }
  0x22   :  { %p3229_p5 = scmp.lt.s32.totalorder %s3227_s3, %s3223_s29 }
  0x24   :  { %p3230_p6 = por %p3229_p5, %p3228_p4 }
  0x26   :  { %p3231_p7 = pnand %p3230_p6, %p3224_p3 }
  0x28   :  { %3234 = shalt.err (!%p3231_p7)
}
  0x29   :  { %61 = dma.hbm_to_vmem [thread:$0]  %s4386_s26, 16, %s59_s30, [#allocation6]  }
  0x2a   :  { %s4387_s1 = sld [smem:[#allocation46_spill]] }
  0x30   :  { %s3235_s6 = scalar_lea.hbm %s4387_s1, 16 }
  0x31   :  { %p3236_p8 = scmp.ne.s32.totalorder %s4387_s1, %s3235_s6  ;;  %p3239_p9 = scmp.lt.u32.totalorder %s3235_s6, %s4387_s1 }
  0x33   :  { %p3241_p10 = pnand %p3239_p9, %p3236_p8 }
  0x35   :  { %3244 = shalt.err (!%p3241_p10)
}
  0x36   :  { %s3245_s29 = scalar_lea.vmem %s85_s25, 16  ;;  %s3249_s3 = scalar_lea.vmem %s85_s25, 32 }
  0x37   :  { %p3246_p11 = scmp.ne.s32.totalorder %s85_s25, %s3245_s29  ;;  %p3250_p12 = scmp.lt.s32.totalorder %s85_s25, %s85_s25 }
  0x38   :  { %p3251_p13 = scmp.lt.s32.totalorder %s3249_s3, %s3245_s29 }
  0x3a   :  { %p3252_p0 = por %p3251_p13, %p3250_p12 }
  0x3c   :  { %p3253_p1 = pnand %p3252_p0, %p3246_p11 }
  0x3e   :  { %3256 = shalt.err (!%p3253_p1)
}
  0x3f   :  { %87 = dma.hbm_to_vmem [thread:$0]  %s4387_s1, 16, %s85_s25, [#allocation9]  }
  0x40   :  { %s3631_s0 = smov [#allocation11]   ;;  %s3632_s24 = smov [#allocation14]  }
  0x41   :  { %s105_s4 = sshll.u32 %s3631_s0, 4  ;;  %s129_s5 = sshll.u32 %s3632_s24, 4  ;;  %s106_s4 = int_to_ptr.vmem [resolvable:$true] %s105_s4  ;;  %s3797_s5 = int_to_ptr.vmem [resolvable:$true] %s129_s5 }
  0x42   :  { %s3257_s2 = scalar_lea.hbm %s4354_s8, 128 }
  0x43   :  { %p3258_p2 = scmp.ne.s32.totalorder %s4354_s8, %s3257_s2  ;;  %p3261_p3 = scmp.lt.u32.totalorder %s3257_s2, %s4354_s8 }
  0x45   :  { %p3263_p4 = pnand %p3261_p3, %p3258_p2 }
  0x47   :  { %3266 = shalt.err (!%p3263_p4)
}
  0x48   :  { %s3267_s25 = scalar_lea.vmem %s106_s4, 128  ;;  %p3272_p6 = scmp.lt.s32.totalorder %s106_s4, %s106_s4 }
  0x49   :  { %p3268_p5 = scmp.ne.s32.totalorder %s106_s4, %s3267_s25  ;;  %p3273_p7 = scmp.lt.s32.totalorder %s3267_s25, %s3267_s25 }
  0x4b   :  { %p3274_p8 = por %p3273_p7, %p3272_p6 }
  0x4d   :  { %p3275_p9 = pnand %p3274_p8, %p3268_p5 }
  0x4f   :  { %3278 = shalt.err (!%p3275_p9)
}
  0x50   :  { %s3633_s1 = smov 64   ;;  %s3634_s30 = smov 4  }
  0x51   :  { %111 = dma.hbm_to_vmem [thread:$0]  %s4354_s8, 128, %s106_s4, [#allocation12], %s3633_s1, %s3633_s1, %s3634_s30  }
  0x52   :  { %s3279_s27 = scalar_lea.hbm %s4357_s11, 1024 }
  0x53   :  { %p3280_p10 = scmp.ne.s32.totalorder %s4357_s11, %s3279_s27  ;;  %p3283_p11 = scmp.lt.u32.totalorder %s3279_s27, %s4357_s11 }
  0x55   :  { %p3285_p12 = pnand %p3283_p11, %p3280_p10 }
  0x57   :  { %3288 = shalt.err (!%p3285_p12)
}
  0x58   :  { %s3289_s3 = scalar_lea.vmem %s3797_s5, 1024  ;;  %p3294_p0 = scmp.lt.s32.totalorder %s3797_s5, %s3797_s5 }
  0x59   :  { %p3290_p13 = scmp.ne.s32.totalorder %s3797_s5, %s3289_s3  ;;  %p3295_p1 = scmp.lt.s32.totalorder %s3289_s3, %s3289_s3 }
  0x5b   :  { %p3296_p2 = por %p3295_p1, %p3294_p0 }
  0x5d   :  { %p3297_p3 = pnand %p3296_p2, %p3290_p13 }
  0x5f   :  { %3300 = shalt.err (!%p3297_p3)
}
  0x60   :  { %135 = dma.hbm_to_vmem [thread:$0]  %s4357_s11, 1024, %s3797_s5, [#allocation15], %s3633_s1, %s3633_s1, %s3634_s30  }
  0x61   :  { %s3635_s25 = smov [#allocation17]   ;;  %s3636_s0 = smov [#allocation20]  }
  0x62   :  { %s154_s26 = sshll.u32 %s3635_s25, 4  ;;  %s176_s24 = sshll.u32 %s3636_s0, 4  ;;  %s155_s26 = int_to_ptr.vmem [resolvable:$true] %s154_s26  ;;  %s177_s24 = int_to_ptr.vmem [resolvable:$true] %s176_s24 }
  0x63   :  { %s3301_s2 = scalar_lea.hbm %s4360_s14, 16 }
  0x64   :  { %p3302_p4 = scmp.ne.s32.totalorder %s4360_s14, %s3301_s2  ;;  %p3305_p5 = scmp.lt.u32.totalorder %s3301_s2, %s4360_s14 }
  0x66   :  { %p3307_p6 = pnand %p3305_p5, %p3302_p4 }
  0x68   :  { %3310 = shalt.err (!%p3307_p6)
}
  0x69   :  { %s3311_s11 = scalar_lea.vmem %s155_s26, 16  ;;  %s3315_s5 = scalar_lea.vmem %s155_s26, 32 }
  0x6a   :  { %p3312_p7 = scmp.ne.s32.totalorder %s155_s26, %s3311_s11  ;;  %p3316_p8 = scmp.lt.s32.totalorder %s155_s26, %s155_s26 }
  0x6b   :  { %p3317_p9 = scmp.lt.s32.totalorder %s3315_s5, %s3311_s11 }
  0x6d   :  { %p3318_p10 = por %p3317_p9, %p3316_p8 }
  0x6f   :  { %p3319_p11 = pnand %p3318_p10, %p3312_p7 }
  0x71   :  { %3322 = shalt.err (!%p3319_p11)
}
  0x72   :  { %157 = dma.hbm_to_vmem [thread:$0]  %s4360_s14, 16, %s155_s26, [#allocation18]  }
  0x73   :  { %s3323_s6 = scalar_lea.hbm %s4362_s16, 16 }
  0x74   :  { %p3324_p12 = scmp.ne.s32.totalorder %s4362_s16, %s3323_s6  ;;  %p3327_p13 = scmp.lt.u32.totalorder %s3323_s6, %s4362_s16 }
  0x76   :  { %p3329_p0 = pnand %p3327_p13, %p3324_p12 }
  0x78   :  { %3332 = shalt.err (!%p3329_p0)
}
  0x79   :  { %s3333_s29 = scalar_lea.vmem %s177_s24, 16  ;;  %s3337_s3 = scalar_lea.vmem %s177_s24, 32 }
  0x7a   :  { %p3334_p1 = scmp.ne.s32.totalorder %s177_s24, %s3333_s29  ;;  %p3338_p2 = scmp.lt.s32.totalorder %s177_s24, %s177_s24 }
  0x7b   :  { %p3339_p3 = scmp.lt.s32.totalorder %s3337_s3, %s3333_s29 }
  0x7d   :  { %p3340_p4 = por %p3339_p3, %p3338_p2 }
  0x7f   :  { %p3341_p5 = pnand %p3340_p4, %p3334_p1 }
  0x81   :  { %3344 = shalt.err (!%p3341_p5)
}
  0x82   :  { %179 = dma.hbm_to_vmem [thread:$0]  %s4362_s16, 16, %s177_s24, [#allocation21]  }
  0x83   :  { %s3637_s11 = smov [#allocation23]   ;;  %s3638_s8 = smov [#allocation26]  }
  0x84   :  { %s198_s5 = sshll.u32 %s3637_s11, 4  ;;  %s219_s4 = sshll.u32 %s3638_s8, 4  ;;  %s199_s5 = int_to_ptr.vmem [resolvable:$true] %s198_s5  ;;  %s3858_s4 = int_to_ptr.vmem [resolvable:$true] %s219_s4 }
  0x85   :  { %s3345_s6 = scalar_lea.hbm %s4364_s18, 16 }
  0x86   :  { %p3346_p6 = scmp.ne.s32.totalorder %s4364_s18, %s3345_s6  ;;  %p3349_p7 = scmp.lt.u32.totalorder %s3345_s6, %s4364_s18 }
  0x88   :  { %p3351_p8 = pnand %p3349_p7, %p3346_p6 }
  0x8a   :  { %3354 = shalt.err (!%p3351_p8)
}
  0x8b   :  { %s3355_s16 = scalar_lea.vmem %s199_s5, 16  ;;  %s3359_s24 = scalar_lea.vmem %s199_s5, 32 }
  0x8c   :  { %p3356_p9 = scmp.ne.s32.totalorder %s199_s5, %s3355_s16  ;;  %p3360_p10 = scmp.lt.s32.totalorder %s199_s5, %s199_s5 }
  0x8d   :  { %p3361_p11 = scmp.lt.s32.totalorder %s3359_s24, %s3355_s16 }
  0x8f   :  { %p3362_p12 = por %p3361_p11, %p3360_p10 }
  0x91   :  { %p3363_p13 = pnand %p3362_p12, %p3356_p9 }
  0x93   :  { %3366 = shalt.err (!%p3363_p13)
}
  0x94   :  { %201 = dma.hbm_to_vmem [thread:$0]  %s4364_s18, 16, %s199_s5, [#allocation24]  }
  0x95   :  { %s3367_s11 = scalar_lea.hbm %s4367_s21, 128 }
  0x96   :  { %p3368_p0 = scmp.ne.s32.totalorder %s4367_s21, %s3367_s11  ;;  %p3371_p1 = scmp.lt.u32.totalorder %s3367_s11, %s4367_s21 }
  0x98   :  { %p3373_p2 = pnand %p3371_p1, %p3368_p0 }
  0x9a   :  { %3376 = shalt.err (!%p3373_p2)
}
  0x9b   :  { %s3377_s27 = scalar_lea.vmem %s3858_s4, 128  ;;  %p3382_p4 = scmp.lt.s32.totalorder %s3858_s4, %s3858_s4 }
  0x9c   :  { %p3378_p3 = scmp.ne.s32.totalorder %s3858_s4, %s3377_s27  ;;  %p3383_p5 = scmp.lt.s32.totalorder %s3377_s27, %s3377_s27 }
  0x9e   :  { %p3384_p6 = por %p3383_p5, %p3382_p4 }
  0xa0   :  { %p3385_p7 = pnand %p3384_p6, %p3378_p3 }
  0xa2   :  { %3388 = shalt.err (!%p3385_p7)
}
  0xa3   :  { %225 = dma.hbm_to_vmem [thread:$0]  %s4367_s21, 128, %s3858_s4, [#allocation27], %s3633_s1, %s3633_s1, %s3634_s30  }
  0xa4   :  { %s3639_s2 = smov [#allocation2]   ;;  %s3640_s28 = smov [#allocation7]  }
  0xa5   :  { %s45_s7 = sshll.u32 %s3639_s2, 4  ;;  %s71_s16 = sshll.u32 %s3640_s28, 4  ;;  %s46_s7 = int_to_ptr.vmem [resolvable:$true] %s45_s7  ;;  %s3892_s16 = int_to_ptr.vmem [resolvable:$true] %s71_s16 }
  0xa6   :  { %s4388_s3 = sld [smem:[#allocation41_spill]] }
  0xac   :  { %s3389_s14 = scalar_lea.hbm %s4388_s3, 576 }
  0xad   :  { %p3390_p8 = scmp.ne.s32.totalorder %s4388_s3, %s3389_s14  ;;  %p3393_p9 = scmp.lt.u32.totalorder %s3389_s14, %s4388_s3 }
  0xaf   :  { %p3395_p10 = pnand %p3393_p9, %p3390_p8 }
  0xb1   :  { %3398 = shalt.err (!%p3395_p10)
}
  0xb2   :  { %s3399_s21 = scalar_lea.vmem %s46_s7, 576  ;;  %p3404_p12 = scmp.lt.s32.totalorder %s46_s7, %s46_s7 }
  0xb3   :  { %p3400_p11 = scmp.ne.s32.totalorder %s46_s7, %s3399_s21  ;;  %p3405_p13 = scmp.lt.s32.totalorder %s3399_s21, %s3399_s21 }
  0xb5   :  { %p3406_p0 = por %p3405_p13, %p3404_p12 }
  0xb7   :  { %p3407_p1 = pnand %p3406_p0, %p3400_p11 }
  0xb9   :  { %3410 = shalt.err (!%p3407_p1)
}
  0xba   :  { %51 = dma.hbm_to_vmem [thread:$0]  %s4388_s3, 576, %s46_s7, [#allocation3], %s3633_s1, %s3633_s1, %s3634_s30  }
  0xbb   :  { %s4389_s18 = sld [smem:[#allocation45_spill]] }
  0xc1   :  { %s3411_s5 = scalar_lea.hbm %s4389_s18, 960 }
  0xc2   :  { %p3412_p2 = scmp.ne.s32.totalorder %s4389_s18, %s3411_s5  ;;  %p3415_p3 = scmp.lt.u32.totalorder %s3411_s5, %s4389_s18 }
  0xc4   :  { %p3417_p4 = pnand %p3415_p3, %p3412_p2 }
  0xc6   :  { %3420 = shalt.err (!%p3417_p4)
}
  0xc7   :  { %s3421_s14 = scalar_lea.vmem %s3892_s16, 960  ;;  %p3426_p6 = scmp.lt.s32.totalorder %s3892_s16, %s3892_s16 }
  0xc8   :  { %p3422_p5 = scmp.ne.s32.totalorder %s3892_s16, %s3421_s14  ;;  %p3427_p7 = scmp.lt.s32.totalorder %s3421_s14, %s3421_s14 }
  0xca   :  { %p3428_p8 = por %p3427_p7, %p3426_p6 }
  0xcc   :  { %p3429_p9 = pnand %p3428_p8, %p3422_p5 }
  0xce   :  { %3432 = shalt.err (!%p3429_p9)
}
  0xcf   :  { %77 = dma.hbm_to_vmem [thread:$0]  %s4389_s18, 960, %s3892_s16, [#allocation6], %s3633_s1, %s3633_s1, %s3634_s30  }
  0xd0   :  { %s3641_s26 = smov [#allocation10]   ;;  %s3642_s8 = smov [#allocation13]  }
  0xd1   :  { %s93_s11 = sshll.u32 %s3641_s26, 4  ;;  %s120_s25 = sshll.u32 %s3642_s8, 4  ;;  %s94_s11 = int_to_ptr.vmem [resolvable:$true] %s93_s11  ;;  %s121_s25 = int_to_ptr.vmem [resolvable:$true] %s120_s25 }
  0xd2   :  { %s4390_s0 = sld [smem:[#allocation47_spill]] }
  0xd8   :  { %s3433_s6 = scalar_lea.hbm %s4390_s0, 1024 }
  0xd9   :  { %p3434_p10 = scmp.ne.s32.totalorder %s4390_s0, %s3433_s6  ;;  %p3437_p11 = scmp.lt.u32.totalorder %s3433_s6, %s4390_s0 }
  0xdb   :  { %p3439_p12 = pnand %p3437_p11, %p3434_p10 }
  0xdd   :  { %3442 = shalt.err (!%p3439_p12)
}
  0xde   :  { %s3443_s16 = scalar_lea.vmem %s94_s11, 1024  ;;  %p3448_p0 = scmp.lt.s32.totalorder %s94_s11, %s94_s11 }
  0xdf   :  { %p3444_p13 = scmp.ne.s32.totalorder %s94_s11, %s3443_s16  ;;  %p3449_p1 = scmp.lt.s32.totalorder %s3443_s16, %s3443_s16 }
  0xe1   :  { %p3450_p2 = por %p3449_p1, %p3448_p0 }
  0xe3   :  { %p3451_p3 = pnand %p3450_p2, %p3444_p13 }
  0xe5   :  { %3454 = shalt.err (!%p3451_p3)
}
  0xe6   :  { %99 = dma.hbm_to_vmem [thread:$0]  %s4390_s0, 1024, %s94_s11, [#allocation9], %s3633_s1, %s3633_s1, %s3634_s30  }
  0xe7   :  { %s3455_s7 = scalar_lea.hbm %s4356_s10, 16 }
  0xe8   :  { %p3456_p4 = scmp.ne.s32.totalorder %s4356_s10, %s3455_s7  ;;  %p3459_p5 = scmp.lt.u32.totalorder %s3455_s7, %s4356_s10 }
  0xea   :  { %p3461_p6 = pnand %p3459_p5, %p3456_p4 }
  0xec   :  { %3464 = shalt.err (!%p3461_p6)
}
  0xed   :  { %s3465_s4 = scalar_lea.vmem %s121_s25, 16  ;;  %s3469_s6 = scalar_lea.vmem %s121_s25, 32 }
  0xee   :  { %p3466_p7 = scmp.ne.s32.totalorder %s121_s25, %s3465_s4  ;;  %p3470_p8 = scmp.lt.s32.totalorder %s121_s25, %s121_s25 }
  0xef   :  { %p3471_p9 = scmp.lt.s32.totalorder %s3469_s6, %s3465_s4 }
  0xf1   :  { %p3472_p10 = por %p3471_p9, %p3470_p8 }
  0xf3   :  { %p3473_p11 = pnand %p3472_p10, %p3466_p7 }
  0xf5   :  { %3476 = shalt.err (!%p3473_p11)
}
  0xf6   :  { %123 = dma.hbm_to_vmem [thread:$0]  %s4356_s10, 16, %s121_s25, [#allocation12]  }
  0xf7   :  { %s3643_s27 = smov [#allocation16]   ;;  %s3644_s2 = smov [#allocation19]  }
  0xf8   :  { %s142_s5 = sshll.u32 %s3643_s27, 4  ;;  %s163_s28 = sshll.u32 %s3644_s2, 4  ;;  %s143_s5 = int_to_ptr.vmem [resolvable:$true] %s142_s5  ;;  %s3956_s28 = int_to_ptr.vmem [resolvable:$true] %s163_s28 }
  0xf9   :  { %s3477_s24 = scalar_lea.hbm %s4358_s12, 64 }
  0xfa   :  { %p3478_p12 = scmp.ne.s32.totalorder %s4358_s12, %s3477_s24  ;;  %p3481_p13 = scmp.lt.u32.totalorder %s3477_s24, %s4358_s12 }
  0xfc   :  { %p3483_p0 = pnand %p3481_p13, %p3478_p12 }
  0xfe   :  { %3486 = shalt.err (!%p3483_p0)
}
  0xff   :  { %s3487_s10 = scalar_lea.vmem %s143_s5, 64  ;;  %p3492_p2 = scmp.lt.s32.totalorder %s143_s5, %s143_s5 }
 0x100   :  { %p3488_p1 = scmp.ne.s32.totalorder %s143_s5, %s3487_s10  ;;  %p3493_p3 = scmp.lt.s32.totalorder %s3487_s10, %s3487_s10 }
 0x102   :  { %p3494_p4 = por %p3493_p3, %p3492_p2 }
 0x104   :  { %p3495_p5 = pnand %p3494_p4, %p3488_p1 }
 0x106   :  { %3498 = shalt.err (!%p3495_p5)
}
 0x107   :  { %145 = dma.hbm_to_vmem [thread:$0]  %s4358_s12, 64, %s143_s5, [#allocation15]  }
 0x108   :  { %s3499_s4 = scalar_lea.hbm %s4361_s15, 1024 }
 0x109   :  { %p3500_p6 = scmp.ne.s32.totalorder %s4361_s15, %s3499_s4  ;;  %p3503_p7 = scmp.lt.u32.totalorder %s3499_s4, %s4361_s15 }
 0x10b   :  { %p3505_p8 = pnand %p3503_p7, %p3500_p6 }
 0x10d   :  { %3508 = shalt.err (!%p3505_p8)
}
 0x10e   :  { %s3509_s2 = scalar_lea.vmem %s3956_s28, 1024  ;;  %p3514_p10 = scmp.lt.s32.totalorder %s3956_s28, %s3956_s28 }
 0x10f   :  { %p3510_p9 = scmp.ne.s32.totalorder %s3956_s28, %s3509_s2  ;;  %p3515_p11 = scmp.lt.s32.totalorder %s3509_s2, %s3509_s2 }
 0x111   :  { %p3516_p12 = por %p3515_p11, %p3514_p10 }
 0x113   :  { %p3517_p13 = pnand %p3516_p12, %p3510_p9 }
 0x115   :  { %3520 = shalt.err (!%p3517_p13)
}
 0x116   :  { %169 = dma.hbm_to_vmem [thread:$0]  %s4361_s15, 1024, %s3956_s28, [#allocation18], %s3633_s1, %s3633_s1, %s3634_s30  }
 0x117   :  { %s3645_s16 = smov [#allocation22]   ;;  %s3646_s24 = smov [#allocation25]  }
 0x118   :  { %s185_s18 = sshll.u32 %s3645_s16, 4  ;;  %s210_s29 = sshll.u32 %s3646_s24, 4  ;;  %s186_s18 = int_to_ptr.vmem [resolvable:$true] %s185_s18  ;;  %s211_s29 = int_to_ptr.vmem [resolvable:$true] %s210_s29 }
 0x119   :  { %s3521_s3 = scalar_lea.hbm %s4363_s17, 256 }
 0x11a   :  { %p3522_p0 = scmp.ne.s32.totalorder %s4363_s17, %s3521_s3  ;;  %p3525_p1 = scmp.lt.u32.totalorder %s3521_s3, %s4363_s17 }
 0x11c   :  { %p3527_p2 = pnand %p3525_p1, %p3522_p0 }
 0x11e   :  { %3530 = shalt.err (!%p3527_p2)
}
 0x11f   :  { %s3531_s15 = scalar_lea.vmem %s186_s18, 256  ;;  %p3536_p4 = scmp.lt.s32.totalorder %s186_s18, %s186_s18 }
 0x120   :  { %p3532_p3 = scmp.ne.s32.totalorder %s186_s18, %s3531_s15  ;;  %p3537_p5 = scmp.lt.s32.totalorder %s3531_s15, %s3531_s15 }
 0x122   :  { %p3538_p6 = por %p3537_p5, %p3536_p4 }
 0x124   :  { %p3539_p7 = pnand %p3538_p6, %p3532_p3 }
 0x126   :  { %3542 = shalt.err (!%p3539_p7)
}
 0x127   :  { %191 = dma.hbm_to_vmem [thread:$0]  %s4363_s17, 256, %s186_s18, [#allocation21], %s3633_s1, %s3633_s1, %s3634_s30  }
 0x128   :  { %s3543_s11 = scalar_lea.hbm %s4366_s20, 16 }
 0x129   :  { %p3544_p8 = scmp.ne.s32.totalorder %s4366_s20, %s3543_s11  ;;  %p3547_p9 = scmp.lt.u32.totalorder %s3543_s11, %s4366_s20 }
 0x12b   :  { %p3549_p10 = pnand %p3547_p9, %p3544_p8 }
 0x12d   :  { %3552 = shalt.err (!%p3549_p10)
}
 0x12e   :  { %s3553_s5 = scalar_lea.vmem %s211_s29, 16  ;;  %s3557_s16 = scalar_lea.vmem %s211_s29, 32 }
 0x12f   :  { %p3554_p11 = scmp.ne.s32.totalorder %s211_s29, %s3553_s5  ;;  %p3558_p12 = scmp.lt.s32.totalorder %s211_s29, %s211_s29 }
 0x130   :  { %p3559_p13 = scmp.lt.s32.totalorder %s3557_s16, %s3553_s5 }
 0x132   :  { %p3560_p0 = por %p3559_p13, %p3558_p12 }
 0x134   :  { %p3561_p1 = pnand %p3560_p0, %p3554_p11 }
 0x136   :  { %3564 = shalt.err (!%p3561_p1)
}
 0x137   :  { %213 = dma.hbm_to_vmem [thread:$0]  %s4366_s20, 16, %s211_s29, [#allocation24]  }
 0x138   :  { %s3647_s30 = smov [#allocation28]   ;;  %s3565_s7 = scalar_lea.hbm %s4368_s22, 16 }
 0x139   :  { %s232_s18 = sshll.u32 %s3647_s30, 4  ;;  %p3566_p2 = scmp.ne.s32.totalorder %s4368_s22, %s3565_s7  ;;  %s233_s18 = int_to_ptr.vmem [resolvable:$true] %s232_s18 }
 0x13a   :  { %p3569_p3 = scmp.lt.u32.totalorder %s3565_s7, %s4368_s22 }
 0x13c   :  { %p3571_p4 = pnand %p3569_p3, %p3566_p2 }
 0x13e   :  { %3574 = shalt.err (!%p3571_p4)
}
 0x13f   :  { %s3575_s8 = scalar_lea.vmem %s233_s18, 16  ;;  %s3579_s20 = scalar_lea.vmem %s233_s18, 32 }
 0x140   :  { %p3576_p5 = scmp.ne.s32.totalorder %s233_s18, %s3575_s8  ;;  %p3580_p6 = scmp.lt.s32.totalorder %s233_s18, %s233_s18 }
 0x141   :  { %p3581_p7 = scmp.lt.s32.totalorder %s3579_s20, %s3575_s8 }
 0x143   :  { %p3582_p8 = por %p3581_p7, %p3580_p6 }
 0x145   :  { %p3583_p9 = pnand %p3582_p8, %p3576_p5 }
 0x147   :  { %3586 = shalt.err (!%p3583_p9)
}
 0x148   :  { %235 = dma.hbm_to_vmem [thread:$0]  %s4368_s22, 16, %s233_s18, [#allocation27]  }
 0x149   :  { %3609 = dma.done.wait [#allocation3], 576  }
 0x14a   :  { %3610 = vsyncadd [#allocation3], 4294966720 }
 0x14b   :  { %3611 = dma.done.wait [#allocation6], 976  }
 0x14c   :  { %3612 = vsyncadd [#allocation6], 4294966320 }
 0x14d   :  { %3613 = dma.done.wait [#allocation9], 1040  }
 0x14e   :  { %3614 = vsyncadd [#allocation9], 4294966256 }
 0x14f   :  { %3615 = dma.done.wait [#allocation12], 144  }
 0x150   :  { %3616 = vsyncadd [#allocation12], 4294967152 }
 0x151   :  { %3617 = dma.done.wait [#allocation15], 1088  }
 0x152   :  { %3618 = vsyncadd [#allocation15], 4294966208 }
 0x153   :  { %3619 = dma.done.wait [#allocation18], 1040  }
 0x154   :  { %3620 = vsyncadd [#allocation18], 4294966256 }
 0x155   :  { %3621 = dma.done.wait [#allocation21], 272  }
 0x156   :  { %3622 = vsyncadd [#allocation21], 4294967024 }
 0x157   :  { %3623 = dma.done.wait [#allocation24], 32  }
 0x158   :  { %3624 = vsyncadd [#allocation24], 4294967264 }
 0x159   :  { %3625 = dma.done.wait [#allocation27], 144  }
 0x15a   :  { %3626 = vsyncadd [#allocation27], 4294967152  ;;  %v3648_v0 = vmov 0.0   ;;  %vm3649_vm0 = vmmov 0   ;;  %v3137_v1 = vld [vmem:[#allocation2 + $0xc] sm:$0xff]   ;;  %v3138_v2 = vld [vmem:[#allocation2] sm:$0xff]  }
 0x15b   :  { %2802 = vmatprep.subr.bf16.mxu0 %v3648_v0  ;;  %2818 = vmatprep.subr.bf16.mxu1 %v3648_v0  ;;  %vm346_vm1 = vcmask 1040384   ;;  %v3139_v3 = vld [vmem:[#allocation2 + $0x14] ss:$0 sps:$4 sm:$0x11]   ;;  %s4391_s21 = sld [smem:[#allocation40_spill]]  ;;  %vm336_vm2 = vcmask 146432  }
 0x15c   :  { %2806 = vmatprep.mubr.msk.bf16.mxu0 %vm3649_vm0, %v3648_v0  ;;  %2822 = vmatprep.mubr.msk.bf16.mxu1 %vm3649_vm0, %v3648_v0  ;;  %v3140_v5 = vld [vmem:[#allocation2 + $0x8] ss:$0 sps:$4 sm:$0x11]   ;;  %v348_v7 = vsel %vm346_vm1, %v3139_v3, 0  ;;  %vm303_vm3 = vsmask.f32 7424 }
 0x15d   :  { %2803 = vmatpush3.bf16.msra.mxu0 %v3137_v1  ;;  %2819 = vmatpush3.bf16.msra.mxu1 %v3138_v2  ;;  %v422_v11 = vsel %vm346_vm1, %v3140_v5, 0  ;;  %v3142_v19 = vld [vmem:[#allocation2 + $0x20] ss:$0 sps:$4 sm:$0x11]   ;;  %v3141_v22 = vld [vmem:[#allocation2 + $0x18] sm:$0xff]   ;;  %vm487_vm4 = vcmask 1046528  }
 0x15e   :  { %2804 = vmatprep.subr.bf16.mxu0 %v3648_v0  ;;  %2820 = vmatprep.subr.bf16.mxu1 %v3648_v0  ;;  %v512_v30 = vsel %vm346_vm1, %v3142_v19, 0  ;;  %s4392_s1 = sld [smem:[#allocation43_spill]]  ;;  %vm647_vm5 = vcmask 523264   ;;  %s4393_s4 = sld [smem:[#allocation44_spill]]  ;;  %vm826_vm6 = vcmask 269312   ;;  %vm936_vm7 = vcmask 1043456  }
 0x15f   :  { %vm929_vm8 = vcmask 326656   ;;  %vm1352_vm9 = vcmask 138240   ;;  %vm1439_vm10 = vcmask 392192   ;;  %vm1797_vm11 = vcmask 1044480  }
 0x160   :  { %vm1793_vm12 = vcmask 72704   ;;  %vm2249_vm13 = vcmask 1041408   ;;  %vm2250_vm14 = vcmask 1042432   ;;  %vm2245_vm15 = vcmask 39936  }
 0x161   :  { %v288_v4 = vld [vmem:[%s4391_s21] sm:$0xff]  ;;  %v289_v6 = vld [vmem:[%s4391_s21 + $0x8] sm:$0xff]  ;;  %v290_v8 = vld [vmem:[%s4391_s21 + $0x10] sm:$0xff]  ;;  %2805 = vmatpush3.bf16.msra.mxu0 %v348_v7  ;;  %2821 = vmatpush3.bf16.msra.mxu1 %v422_v11 }
 0x162   :  { %v291_v9 = vld [vmem:[%s4391_s21 + $0x18] sm:$0xff]  ;;  %v293_v10 = vpack.c.bf16 %v289_v6, %v288_v4  ;;  %v292_v13 = vld [vmem:[%s4391_s21 + $0x20] sm:$0xf]  ;;  %2834 = vmatprep.subr.bf16.mxu0 %v3648_v0  ;;  %2850 = vmatprep.subr.bf16.mxu1 %v3648_v0 }
 0x163   :  { %v294_v12 = vpack.c.bf16 %v291_v9, %v290_v8  ;;  %v295_v16 = vpack.c.bf16 %v292_v13, %v292_v13 }
 0x164   :  { %v305_v14 = vshrl.u32 %v293_v10, 16  ;;  %v307_v15 = vshll.u32 %v293_v10, 16  ;;  %v488_v20 = vrot.slane %v293_v10, 1  ;;  %2823 = vmatmul.mubr.msk.bf16.vlgmr.msra.gmra.mrb[0].mxu1 %vm336_vm2, %v293_v10  ;;  %v3143_v37 = vld [vmem:[%s4392_s1] sm:$0xff]   ;;  %v3145_v39 = vld [vmem:[%s4392_s1 + $0x8] sm:$0xff]   ;;  %v3147_v41 = vld [vmem:[%s4392_s1 + $0x10] sm:$0xff]  }
 0x165   :  { %v312_v17 = vshll.u32 %v294_v12, 16  ;;  %v316_v18 = vshrl.u32 %v294_v12, 16  ;;  %v320_v23 = vshll.u32 %v295_v16, 16  ;;  %v324_v24 = vshrl.u32 %v295_v16, 16  ;;  %2826 = vmatprep.mubr.msk.bf16.mxu1 %vm3649_vm0, %v3648_v0  ;;  %v3144_v38 = vld [vmem:[%s4392_s1 + $0x20] sm:$0xff]   ;;  %2851 = vmatpush3.bf16.msra.mxu1 %v3143_v37  ;;  %v3146_v40 = vld [vmem:[%s4392_s1 + $0x28] sm:$0xff]  }
 0x166   :  { %v309_v21 = vrot.slane %v307_v15, 1  ;;  %v489_v25 = vrot.slane %v294_v12, 1  ;;  %v491_v27 = vrot.slane %v295_v16, 1  ;;  %2852 = vmatprep.subr.bf16.mxu1 %v3648_v0  ;;  %v3148_v42 = vld [vmem:[%s4392_s1 + $0x30] sm:$0xff]   ;;  %v3149_v43 = vld [vmem:[%s4392_s1 + $0x18] sm:$0xff]  }
 0x167   :  { %v314_v26 = vrot.slane %v312_v17, 1  ;;  %v322_v29 = vrot.slane %v320_v23, 1  ;;  %v3150_v44 = vld [vmem:[%s4392_s1 + $0x38] sm:$0xff]  }
 0x168   :  { %v310_v28 = vor.u32 %v309_v21, %v305_v14  ;;  %v490_v35 = vsel %vm487_vm4, %v488_v20, %v489_v25  ;;  %v492_v36 = vsel %vm487_vm4, %v489_v25, %v491_v27 }
 0x169   :  { %v318_v32 = vor.u32 %v316_v18, %v314_v26  ;;  %v326_v34 = vor.u32 %v324_v24, %v322_v29  ;;  %2853 = vmatpush3.bf16.msra.mxu1 %v3145_v39 }
 0x16a   :  { %v315_v31 = vsel %vm303_vm3, %v310_v28, %v314_v26  ;;  %2854 = vmatprep.subr.bf16.mxu1 %v3648_v0 }
 0x16b   :  { %2807 = vmatmul.mubr.msk.bf16.vlgmr.msra.gmra.mrb[0].mxu0 %vm336_vm2, %v315_v31  ;;  %v323_v33 = vsel %vm303_vm3, %v318_v32, %v322_v29 }
 0x16c   :  { %2835 = vmatpush3.bf16.msra.mxu0 %v3141_v22  ;;  %2810 = vmatprep.mubr.msk.bf16.mxu0 %vm3649_vm0, %v3648_v0 }
 0x16d   :  { %2836 = vmatprep.subr.bf16.mxu0 %v3648_v0  ;;  %2827 = vmatmul.mubr.msk.bf16.gmra.mrb[4].mxu1 %vm336_vm2, %v294_v12  ;;  %v2532_v12 = vld [vmem:[#allocation5] ss:$0 sm:$0xff] }
 0x16e   :  { %2830 = vmatprep.mubr.msk.bf16.mxu1 %vm3649_vm0, %v3648_v0  ;;  %2855 = vmatpush3.bf16.msra.mxu1 %v3147_v41 }
 0x16f   :  { %2856 = vmatprep.subr.bf16.mxu1 %v3648_v0 }
 0x170   :  { %2837 = vmatpush3.bf16.msra.mxu0 %v512_v30 }
 0x171   :  { %2870 = vmatprep.subr.bf16.mxu0 %v3648_v0 }
 0x172   :  { %2857 = vmatpush3.bf16.msra.mxu1 %v3149_v43 }
 0x173   :  { %2811 = vmatmul.mubr.msk.bf16.gmra.mrb[4].mxu0 %vm336_vm2, %v323_v33 }
 0x174   :  { %2814 = vmatprep.mubr.msk.bf16.mxu0 %vm3649_vm0, %v3648_v0 }
 0x175   :  { %2831 = vmatmul.mubr.msk.bf16.gmra.mrb[8].mxu1 %vm336_vm2, %v295_v16 }
 0x176   :  { %2858 = vmatprep.mubr.msk.bf16.mxu1 %vm3649_vm0, %v3648_v0 }
 0x17b   :  { %2815 = vmatmul.mubr.msk.bf16.gmra.mrb[8].mxu0 %vm336_vm2, %v326_v34 }
 0x17c   :  { %2838 = vmatprep.mubr.msk.bf16.mxu0 %vm3649_vm0, %v3648_v0 }
 0x183   :  { %2839 = vmatmul.mubr.msk.bf16.vlgmr.msra.gmra.mrb[12].mxu0 %vm336_vm2, %v490_v35 }
 0x184   :  { %2842 = vmatprep.mubr.msk.bf16.mxu0 %vm3649_vm0, %v3648_v0  ;;  %2871 = vmatpush3.bf16.msra.mxu0 %v3144_v38 }
 0x185   :  { %2872 = vmatprep.subr.bf16.mxu0 %v3648_v0 }
 0x188   :  { %2873 = vmatpush3.bf16.msra.mxu0 %v3146_v40 }
 0x189   :  { %2874 = vmatprep.subr.bf16.mxu0 %v3648_v0 }
 0x18b   :  { %2843 = vmatmul.mubr.msk.bf16.gmra.mrb[16].mxu0 %vm336_vm2, %v492_v36 }
 0x18c   :  { %2846 = vmatprep.mubr.msk.bf16.mxu0 %vm3649_vm0, %v3648_v0  ;;  %2875 = vmatpush3.bf16.msra.mxu0 %v3148_v42 }
 0x18d   :  { %2876 = vmatprep.subr.bf16.mxu0 %v3648_v0 }
 0x190   :  { %2877 = vmatpush3.bf16.msra.mxu0 %v3150_v44 }
 0x193   :  { %2847 = vmatmul.mubr.msk.bf16.gmra.mrb[20].mxu0 %vm336_vm2, %v491_v27 }
 0x194   :  { %2878 = vmatprep.mubr.msk.bf16.mxu0 %vm3649_vm0, %v3648_v0 }
 0x237   :  { %v458_v45 = vpop.f32.mrb[0].mxu1 }
 0x238   :  { %v2824_v46 = vpop.f32.mrb[1].mxu1 }
 0x239   :  { %v461_v47 = vpop.f32.mrb[2].mxu1 }
 0x23a   :  { %v2825_v49 = vpop.f32.mrb[3].mxu1 }
 0x23e   :  { %v384_v48 = vpop.f32.mrb[0].mxu0 }
 0x23f   :  { %v459_v50 = vadd.f32 %v458_v45, %v384_v48  ;;  %v2808_v51 = vpop.f32.mrb[1].mxu0 }
 0x240   :  { %v387_v52 = vpop.f32.mrb[2].mxu0  ;;  %v466_v55 = vpop.f32.mrb[4].mxu1  ;;  %v3151_v51 = vld [vmem:[%s4393_s4] sm:$0xff]  }
 0x241   :  { %v462_v53 = vadd.f32 %v461_v47, %v387_v52  ;;  %v2809_v54 = vpop.f32.mrb[3].mxu0  ;;  %v2828_v56 = vpop.f32.mrb[5].mxu1  ;;  %v3153_v52 = vld [vmem:[#allocation7] sm:$0xff]  }
 0x242   :  { %v469_v57 = vpop.f32.mrb[6].mxu1  ;;  %2910 = vmatprep.subr.bf16.mxu0 %v3153_v52 }
 0x243   :  { %v2829_v59 = vpop.f32.mrb[7].mxu1 }
 0x246   :  { %v392_v58 = vpop.f32.mrb[4].mxu0 }
 0x247   :  { %v467_v60 = vadd.f32 %v466_v55, %v392_v58  ;;  %v2812_v61 = vpop.f32.mrb[5].mxu0 }
 0x248   :  { %v395_v62 = vpop.f32.mrb[6].mxu0  ;;  %v474_v2 = vpop.f32.mrb[8].mxu1 }
 0x249   :  { %v470_v63 = vadd.f32 %v469_v57, %v395_v62  ;;  %v2813_v1 = vpop.f32.mrb[7].mxu0  ;;  %v2832_v3 = vpop.f32.mrb[9].mxu1 }
 0x24a   :  { %v477_v4 = vpop.f32.mrb[10].mxu1 }
 0x24b   :  { %v2833_v6 = vpop.f32.mrb[11].mxu1 }
 0x24e   :  { %v400_v5 = vpop.f32.mrb[8].mxu0 }
 0x24f   :  { %v475_v7 = vadd.f32 %v474_v2, %v400_v5  ;;  %v2816_v8 = vpop.f32.mrb[9].mxu0 }
 0x250   :  { %v403_v9 = vpop.f32.mrb[10].mxu0 }
 0x251   :  { %v2817_v10 = vpop.f32.mrb[11].mxu0 }
 0x256   :  { %v548_v11 = vpop.f32.mrb[12].mxu0 }
 0x257   :  { %v570_v13 = vadd.f32 %v548_v11, %v459_v50  ;;  %v2840_v14 = vpop.f32.mrb[13].mxu0 }
 0x258   :  { %v551_v15 = vpop.f32.mrb[14].mxu0 }
 0x259   :  { %v582_v16 = vadd.f32 %v2532_v12, %v570_v13  ;;  %v571_v17 = vadd.f32 %v551_v15, %v462_v53  ;;  %v2841_v18 = vpop.f32.mrb[15].mxu0  ;;  %v3154_v53 = vld [vmem:[#allocation7 + $0x8] sm:$0xff]  }
 0x25b   :  { %v583_v19 = vadd.f32 %v2532_v12, %v571_v17  ;;  %v593_v20 = vrot.slane %v582_v16, 1 }
 0x25d   :  { %v594_v21 = vrot.slane %v583_v19, 1 }
 0x25e   :  { %v556_v22 = vpop.f32.mrb[16].mxu0 }
 0x25f   :  { %v595_v23 = vsel %vm487_vm4, %v593_v20, %v594_v21  ;;  %v572_v24 = vadd.f32 %v556_v22, %v467_v60  ;;  %v2844_v25 = vpop.f32.mrb[17].mxu0 }
 0x260   :  { %v607_v26 = vmax.f32 %v582_v16, %v595_v23  ;;  %v559_v27 = vpop.f32.mrb[18].mxu0 }
 0x261   :  { %v584_v28 = vadd.f32 %v2532_v12, %v572_v24  ;;  %v573_v29 = vadd.f32 %v559_v27, %v470_v63  ;;  %v2845_v30 = vpop.f32.mrb[19].mxu0  ;;  %v3650_v27 = vmov 0  }
 0x263   :  { %v596_v31 = vrot.slane %v584_v28, 1  ;;  %v585_v32 = vadd.f32 %v2532_v12, %v573_v29 }
 0x265   :  { %v597_v33 = vsel %vm487_vm4, %v594_v21, %v596_v31  ;;  %v598_v34 = vrot.slane %v585_v32, 1 }
 0x266   :  { %v608_v35 = vmax.f32 %v583_v19, %v597_v33  ;;  %v564_v36 = vpop.f32.mrb[20].mxu0  ;;  %v3156_v33 = vld [vmem:[#allocation7 + $0x10] ss:$0 sps:$4 sm:$0xff]  }
 0x267   :  { %v599_v37 = vsel %vm487_vm4, %v596_v31, %v598_v34  ;;  %v574_v38 = vadd.f32 %v564_v36, %v475_v7  ;;  %v2848_v39 = vpop.f32.mrb[21].mxu0  ;;  %v3152_v31 = vld [vmem:[%s4393_s4 + $0x8] ss:$0 sps:$4 sm:$0x33]   ;;  %v3158_v36 = vld [vmem:[#allocation7 + $0x24] ss:$0 sps:$4 sm:$0xff]  }
 0x268   :  { %v612_v40 = vpack.c.bf16 %v608_v35, %v607_v26  ;;  %v567_v41 = vpop.f32.mrb[22].mxu0  ;;  %v609_v42 = vmax.f32 %v584_v28, %v599_v37  ;;  %v4143_v28 = vsel %vm346_vm1, 65535, %v3650_v27  ;;  %v3157_v35 = vld [vmem:[#allocation7 + $0x1c] sm:$0xff]   ;;  %v938_v37 = vsel %vm936_vm7, %v3158_v36, 0 }
 0x269   :  { %v586_v43 = vadd.f32 %v2532_v12, %v574_v38  ;;  %v2849_v44 = vpop.f32.mrb[23].mxu0  ;;  %v3159_v38 = vld [vmem:[#allocation7 + $0x28] sm:$0xff]   ;;  %vm2320_vm1 = vcmask 261120  }
 0x26a   :  { %2859 = vmatmul.mubr.msk.bf16.vlgmr.msra.gmra.mrb[12].mxu1 %vm647_vm5, %v612_v40  ;;  %2879 = vmatmul.mubr.msk.bf16.vlgmr.msra.gmra.mrb[24].mxu0 %vm647_vm5, %v612_v40 }
 0x26b   :  { %v600_v45 = vrot.slane %v586_v43, 1  ;;  %2862 = vmatprep.mubr.msk.bf16.mxu1 %vm3649_vm0, %v3648_v0  ;;  %2882 = vmatprep.mubr.msk.bf16.mxu0 %vm3649_vm0, %v3648_v0 }
 0x26c   :  { %2911 = vmatpush3.bf16.msra.mxu0 %v3153_v52 }
 0x26d   :  { %v601_v46 = vsel %vm487_vm4, %v598_v34, %v600_v45  ;;  %v611_v49 = vmax.f32 %v586_v43, %v600_v45  ;;  %2912 = vmatprep.subr.bf16.mxu0 %v3154_v53  ;;  %v1008_v34 = vsel %vm936_vm7, %v3156_v33, 0 }
 0x26e   :  { %v610_v47 = vmax.f32 %v585_v32, %v601_v46  ;;  %v3155_v32 = vld [vmem:[#allocation7 + $0x14] sm:$0xff]  }
 0x26f   :  { %v614_v50 = vpack.c.bf16 %v611_v49, %v611_v49 }
 0x270   :  { %v613_v48 = vpack.c.bf16 %v610_v47, %v609_v42  ;;  %2913 = vmatpush3.bf16.msra.mxu0 %v3154_v53 }
 0x271   :  { %3111 = vmatprep.subr.msk.bf16.mxu0 %vm936_vm7, %v3156_v33 }
 0x272   :  { %2863 = vmatmul.mubr.msk.bf16.gmra.mrb[16].mxu1 %vm647_vm5, %v613_v48  ;;  %2883 = vmatmul.mubr.msk.bf16.gmra.mrb[28].mxu0 %vm647_vm5, %v613_v48 }
 0x273   :  { %2866 = vmatprep.mubr.msk.bf16.mxu1 %vm3649_vm0, %v3648_v0  ;;  %2886 = vmatprep.mubr.msk.bf16.mxu0 %vm3649_vm0, %v3648_v0 }
 0x274   :  { %2915 = vmatpush3.bf16.msra.mxu0 %v1008_v34 }
 0x27a   :  { %2867 = vmatmul.mubr.msk.bf16.gmra.mrb[20].mxu1 %vm647_vm5, %v614_v50  ;;  %2887 = vmatmul.mubr.msk.bf16.gmra.mrb[32].mxu0 %vm647_vm5, %v614_v50 }
 0x27b   :  { %2896 = vmatprep.mubr.msk.bf16.mxu1 %vm826_vm6, %v3151_v51 }
 0x33d   :  { %v691_v54 = vpop.f32.mrb[12].mxu1  ;;  %v780_v55 = vpop.f32.mrb[24].mxu0 }
 0x33e   :  { %v802_v56 = vmax.f32 %v691_v54, %v780_v55  ;;  %v2860_v57 = vpop.f32.mrb[13].mxu1  ;;  %v2880_v58 = vpop.f32.mrb[25].mxu0 }
 0x33f   :  { %v694_v59 = vpop.f32.mrb[14].mxu1  ;;  %v783_v60 = vpop.f32.mrb[26].mxu0  ;;  %v3160_v57 = vld [vmem:[#allocation7 + $0x30] sm:$0xff]   ;;  %v3161_v58 = vld [vmem:[#allocation7 + $0x38] ss:$0 sps:$4 sm:$0xff]  }
 0x340   :  { %v803_v61 = vmax.f32 %v694_v59, %v783_v60  ;;  %v2861_v62 = vpop.f32.mrb[15].mxu1  ;;  %v2881_v63 = vpop.f32.mrb[27].mxu0  ;;  %v807_v1 = vmax.f32 %v802_v56, 0.0  ;;  %v1091_v59 = vsel %vm936_vm7, %v3161_v58, 0  ;;  %v3162_v60 = vld [vmem:[#allocation10] sm:$0xff]  }
 0x341   :  { %2930 = vmatprep.subr.bf16.mxu0 %v3162_v60  ;;  %v3164_v62 = vld [vmem:[#allocation10 + $0x8] sm:$0xff]  }
 0x342   :  { %v808_v2 = vmax.f32 %v803_v61, 0.0  ;;  %v3163_v61 = vld [vmem:[#allocation10 + $0x20] sm:$0xff]   ;;  %v3165_v63 = vld [vmem:[#allocation10 + $0x28] sm:$0xff]  }
 0x344   :  { %v812_v3 = vpack.c.bf16 %v808_v2, %v807_v1  ;;  %v3166_v1 = vld [vmem:[#allocation10 + $0x10] sm:$0xff]  }
 0x345   :  { %v699_v4 = vpop.f32.mrb[16].mxu1  ;;  %v788_v5 = vpop.f32.mrb[28].mxu0  ;;  %v3167_v2 = vld [vmem:[#allocation10 + $0x30] sm:$0xff]  }
 0x346   :  { %v804_v6 = vmax.f32 %v699_v4, %v788_v5  ;;  %v2864_v7 = vpop.f32.mrb[17].mxu1  ;;  %v2884_v8 = vpop.f32.mrb[29].mxu0  ;;  %2890 = vmatprep.subr.bf16.mxu1 %v812_v3  ;;  %v3169_v4 = vld [vmem:[#allocation10 + $0x38] sm:$0xff]  }
 0x347   :  { %v702_v9 = vpop.f32.mrb[18].mxu1  ;;  %v791_v10 = vpop.f32.mrb[30].mxu0  ;;  %2891 = vmatpush3.bf16.msra.mxu1 %v812_v3  ;;  %v3168_v3 = vld [vmem:[#allocation10 + $0x18] sm:$0xff]  }
 0x348   :  { %v805_v11 = vmax.f32 %v702_v9, %v791_v10  ;;  %v2865_v12 = vpop.f32.mrb[19].mxu1  ;;  %v2885_v13 = vpop.f32.mrb[31].mxu0  ;;  %v809_v14 = vmax.f32 %v804_v6, 0.0 }
 0x34a   :  { %v810_v15 = vmax.f32 %v805_v11, 0.0 }
 0x34c   :  { %v813_v16 = vpack.c.bf16 %v810_v15, %v809_v14 }
 0x34d   :  { %v707_v17 = vpop.f32.mrb[20].mxu1  ;;  %v796_v18 = vpop.f32.mrb[32].mxu0 }
 0x34e   :  { %v806_v19 = vmax.f32 %v707_v17, %v796_v18  ;;  %v2868_v20 = vpop.f32.mrb[21].mxu1  ;;  %v2888_v21 = vpop.f32.mrb[33].mxu0  ;;  %2892 = vmatprep.subr.bf16.mxu1 %v813_v16  ;;  %v2574_v17 = vld [vmem:[#allocation8] ss:$0 sm:$0xff] }
 0x34f   :  { %v710_v22 = vpop.f32.mrb[22].mxu1  ;;  %v799_v23 = vpop.f32.mrb[34].mxu0  ;;  %2893 = vmatpush3.bf16.msra.mxu1 %v813_v16 }
 0x350   :  { %v811_v24 = vmax.f32 %v806_v19, 0.0  ;;  %v2869_v25 = vpop.f32.mrb[23].mxu1  ;;  %v2889_v26 = vpop.f32.mrb[35].mxu0 }
 0x352   :  { %v814_v29 = vpack.c.bf16 %v811_v24, %v811_v24 }
 0x354   :  { %v836_v30 = vand.u32 %v4143_v28, %v814_v29 }
 0x356   :  { %2894 = vmatprep.subr.bf16.mxu1 %v836_v30 }
 0x357   :  { %2895 = vmatpush3.bf16.msra.mxu1 %v836_v30 }
 0x358   :  { %2900 = vmatprep.subr.bf16.mxu1 %v3155_v32 }
 0x35a   :  { %2897 = vmatmul.mubr.msk.bf16.vlgmr.msra.gmra.mrb[24].mxu1 %vm826_vm6, %v3152_v31 }
 0x35b   :  { %2901 = vmatpush3.bf16.msra.mxu1 %v3155_v32 }
 0x35c   :  { %2902 = vmatprep.subr.bf16.mxu1 %v3157_v35 }
 0x35f   :  { %2903 = vmatpush3.bf16.msra.mxu1 %v3157_v35 }
 0x360   :  { %3110 = vmatprep.subr.msk.bf16.mxu1 %vm936_vm7, %v3158_v36 }
 0x363   :  { %2905 = vmatpush3.bf16.msra.mxu1 %v938_v37 }
 0x364   :  { %2920 = vmatprep.subr.bf16.mxu1 %v3159_v38 }
 0x42d   :  { %v2898_v39 = vpop.f32.mrb[24].mxu1 }
 0x42e   :  { %v887_v40 = vpack.c.bf16 %v2898_v39, %v2898_v39  ;;  %v872_v41 = vpop.f32.mrb[25].mxu1 }
 0x42f   :  { %v2899_v42 = vpop.f32.mrb[26].mxu1 }
 0x430   :  { %v875_v43 = vpop.f32.mrb[27].mxu1  ;;  %v907_v45 = vshll.u32 %v887_v40, 16  ;;  %v1067_v48 = vrot.slane %v887_v40, 1  ;;  %v911_v53 = vshrl.u32 %v887_v40, 16 }
 0x431   :  { %v886_v44 = vpack.c.bf16 %v875_v43, %v872_v41 }
 0x432   :  { %v909_v51 = vrot.slane %v907_v45, 1 }
 0x433   :  { %v902_v46 = vshll.u32 %v886_v44, 16  ;;  %2916 = vmatprep.mubr.msk.bf16.mxu0 %vm929_vm8, %v886_v44  ;;  %v1066_v47 = vrot.slane %v886_v44, 1  ;;  %v900_v49 = vshrl.u32 %v886_v44, 16 }
 0x434   :  { %2917 = vmatmul.mubr.msk.bf16.vlgmr.msra.gmra.mrb[36].mxu0 %vm929_vm8, %v887_v40  ;;  %v913_v56 = vor.u32 %v911_v53, %v909_v51 }
 0x435   :  { %v904_v50 = vrot.slane %v902_v46, 1  ;;  %v1068_v52 = vsel %vm487_vm4, %v1066_v47, %v1067_v48  ;;  %2931 = vmatpush3.bf16.msra.mxu0 %v3162_v60  ;;  %v3176_v60 = vld [vmem:[%s4355_s9 + $0x28] sm:$0xff]  }
 0x436   :  { %2932 = vmatprep.subr.bf16.mxu0 %v3164_v62 }
 0x437   :  { %v905_v54 = vor.u32 %v904_v50, %v900_v49 }
 0x439   :  { %v910_v55 = vsel %vm303_vm3, %v905_v54, %v909_v51  ;;  %2933 = vmatpush3.bf16.msra.mxu0 %v3164_v62 }
 0x43a   :  { %2906 = vmatprep.mubr.msk.bf16.mxu1 %vm929_vm8, %v910_v55  ;;  %2934 = vmatprep.subr.bf16.mxu0 %v3166_v1 }
 0x43b   :  { %2907 = vmatmul.mubr.msk.bf16.vlgmr.msra.gmra.mrb[28].mxu1 %vm929_vm8, %v913_v56  ;;  %v3170_v56 = vld [vmem:[#allocation11] sm:$0x3f]  }
 0x43c   :  { %2921 = vmatpush3.bf16.msra.mxu1 %v3159_v38  ;;  %2926 = vmatprep.mubr.msk.bf16.mxu1 %vm929_vm8, %v1068_v52  ;;  %v3173_v38 = vld [vmem:[%s4355_s9 + $0x18] sm:$0xff]  }
 0x43d   :  { %2922 = vmatprep.subr.bf16.mxu1 %v3160_v57  ;;  %2935 = vmatpush3.bf16.msra.mxu0 %v3166_v1 }
 0x43e   :  { %2936 = vmatprep.subr.bf16.mxu0 %v3168_v3 }
 0x440   :  { %2923 = vmatpush3.bf16.msra.mxu1 %v3160_v57  ;;  %v3171_v57 = vld [vmem:[%s4355_s9] sm:$0xff]  }
 0x441   :  { %3112 = vmatprep.subr.msk.bf16.mxu1 %vm936_vm7, %v3161_v58  ;;  %2937 = vmatpush3.bf16.msra.mxu0 %v3168_v3  ;;  %v3172_v58 = vld [vmem:[%s4355_s9 + $0x8] sm:$0xff]  }
 0x442   :  { %2954 = vmatprep.subr.bf16.mxu0 %v3648_v0 }
 0x444   :  { %2925 = vmatpush3.bf16.msra.mxu1 %v1091_v59  ;;  %v3175_v59 = vld [vmem:[%s4355_s9 + $0x20] sm:$0xff]  }
 0x445   :  { %2942 = vmatprep.subr.bf16.mxu1 %v3163_v61 }
 0x447   :  { %2927 = vmatmul.mubr.msk.bf16.vlgmr.msra.gmra.mrb[32].mxu1 %vm929_vm8, %v1067_v48 }
 0x448   :  { %2943 = vmatpush3.bf16.msra.mxu1 %v3163_v61 }
 0x449   :  { %2944 = vmatprep.subr.bf16.mxu1 %v3165_v63 }
 0x44c   :  { %2945 = vmatpush3.bf16.msra.mxu1 %v3165_v63 }
 0x44d   :  { %2946 = vmatprep.subr.bf16.mxu1 %v3167_v2 }
 0x450   :  { %2947 = vmatpush3.bf16.msra.mxu1 %v3167_v2 }
 0x451   :  { %2948 = vmatprep.subr.bf16.mxu1 %v3169_v4 }
 0x454   :  { %2949 = vmatpush3.bf16.msra.mxu1 %v3169_v4 }
 0x455   :  { %2962 = vmatprep.subr.bf16.mxu1 %v3648_v0 }
 0x507   :  { %v2918_v5 = vpop.f32.mrb[36].mxu0 }
 0x508   :  { %v1044_v6 = vpop.f32.mrb[37].mxu0 }
 0x509   :  { %v2919_v7 = vpop.f32.mrb[38].mxu0 }
 0x50a   :  { %v1047_v8 = vpop.f32.mrb[39].mxu0 }
 0x50e   :  { %v2908_v9 = vpop.f32.mrb[28].mxu1 }
 0x50f   :  { %v1053_v10 = vadd.f32 %v2918_v5, %v2908_v9  ;;  %v974_v11 = vpop.f32.mrb[29].mxu1  ;;  %v3179_v9 = vld [vmem:[%s4355_s9 + $0x40] sm:$0xff]  }
 0x510   :  { %v1045_v12 = vadd.f32 %v1044_v6, %v974_v11  ;;  %v2909_v13 = vpop.f32.mrb[30].mxu1  ;;  %v3177_v6 = vld [vmem:[%s4355_s9 + $0x30] sm:$0xff]  }
 0x511   :  { %v977_v14 = vpop.f32.mrb[31].mxu1  ;;  %v3180_v11 = vld [vmem:[#allocation14] sm:$0xff]   ;;  %v3182_v13 = vld [vmem:[#allocation14 + $0x8] sm:$0xff]  }
 0x512   :  { %v1048_v15 = vadd.f32 %v1047_v8, %v977_v14  ;;  %v3178_v8 = vld [vmem:[%s4355_s9 + $0x38] sm:$0xff]  }
 0x513   :  { %v3183_v14 = vld [vmem:[#allocation14 + $0x28] sm:$0xff]  }
 0x51a   :  { %v2928_v16 = vpop.f32.mrb[32].mxu1 }
 0x51b   :  { %v1143_v18 = vadd.f32 %v2928_v16, %v1053_v10  ;;  %v1127_v19 = vpop.f32.mrb[33].mxu1  ;;  %v3185_v16 = vld [vmem:[#allocation14 + $0x30] sm:$0xff]  }
 0x51c   :  { %v1141_v20 = vadd.f32 %v1127_v19, %v1045_v12  ;;  %v2929_v21 = vpop.f32.mrb[34].mxu1  ;;  %v3181_v12 = vld [vmem:[#allocation14 + $0x20] sm:$0xff]  }
 0x51d   :  { %v1153_v22 = vadd.f32 %v2574_v17, %v1143_v18  ;;  %v1130_v23 = vpop.f32.mrb[35].mxu1  ;;  %v3187_v18 = vld [vmem:[#allocation14 + $0x38] sm:$0xff]  }
 0x51e   :  { %v1151_v24 = vadd.f32 %v2574_v17, %v1141_v20  ;;  %v1142_v25 = vadd.f32 %v1130_v23, %v1048_v15  ;;  %v3184_v15 = vld [vmem:[#allocation14 + $0x10] sm:$0xff]  }
 0x51f   :  { %v1160_v26 = vrot.slane %v1153_v22, 1 }
 0x520   :  { %v1152_v27 = vadd.f32 %v2574_v17, %v1142_v25  ;;  %v1157_v29 = vrot.slane %v1151_v24, 1  ;;  %v3186_v17 = vld [vmem:[#allocation14 + $0x18] sm:$0xff]  }
 0x521   :  { %v1167_v31 = vmax.f32 %v1153_v22, %v1160_v26 }
 0x522   :  { %v1158_v30 = vrot.slane %v1152_v27, 1 }
 0x523   :  { %v1169_v37 = vpack.c.bf16 %v1167_v31, %v1167_v31  ;;  %v2613_v31 = vld [vmem:[#allocation13] ss:$0 sm:$0xff] }
 0x524   :  { %v1159_v32 = vsel %vm487_vm4, %v1157_v29, %v1158_v30  ;;  %v1161_v33 = vsel %vm487_vm4, %v1158_v30, %v1160_v26 }
 0x525   :  { %v1165_v34 = vmax.f32 %v1151_v24, %v1159_v32  ;;  %v1166_v35 = vmax.f32 %v1152_v27, %v1161_v33 }
 0x527   :  { %v1168_v36 = vpack.c.bf16 %v1166_v35, %v1165_v34 }
 0x529   :  { %2938 = vmatprep.mubr.msk.bf16.mxu0 %vm647_vm5, %v1168_v36  ;;  %2950 = vmatprep.mubr.msk.bf16.mxu1 %vm647_vm5, %v1168_v36 }
 0x52a   :  { %2939 = vmatmul.mubr.msk.bf16.vlgmr.msra.gmra.mrb[40].mxu0 %vm647_vm5, %v1169_v37  ;;  %2951 = vmatmul.mubr.msk.bf16.vlgmr.msra.gmra.mrb[36].mxu1 %vm647_vm5, %v1169_v37 }
 0x52b   :  { %2958 = vmatprep.mubr.msk.bf16.mxu0 %vm3649_vm0, %v3648_v0  ;;  %2968 = vmatprep.mubr.msk.bf16.mxu1 %vm3649_vm0, %v3648_v0 }
 0x52c   :  { %2963 = vmatpush3.bf16.msra.mxu1 %v3173_v38 }
 0x52d   :  { %2964 = vmatprep.subr.bf16.mxu1 %v3648_v0 }
 0x530   :  { %2965 = vmatpush3.bf16.msra.mxu1 %v3175_v59 }
 0x531   :  { %2966 = vmatprep.subr.bf16.mxu1 %v3648_v0 }
 0x534   :  { %2967 = vmatpush3.bf16.msra.mxu1 %v3176_v60 }
 0x535   :  { %2982 = vmatprep.subr.bf16.mxu1 %v3648_v0 }
 0x5fd   :  { %v2940_v39 = vpop.f32.mrb[40].mxu0  ;;  %v2952_v40 = vpop.f32.mrb[36].mxu1 }
 0x5fe   :  { %v1339_v41 = vmax.f32 %v2940_v39, %v2952_v40  ;;  %v1242_v42 = vpop.f32.mrb[41].mxu0  ;;  %v1323_v43 = vpop.f32.mrb[37].mxu1 }
 0x5ff   :  { %v1337_v44 = vmax.f32 %v1242_v42, %v1323_v43  ;;  %v2941_v45 = vpop.f32.mrb[42].mxu0  ;;  %v2953_v46 = vpop.f32.mrb[38].mxu1 }
 0x600   :  { %v1245_v47 = vpop.f32.mrb[43].mxu0  ;;  %v1326_v48 = vpop.f32.mrb[39].mxu1  ;;  %v1342_v49 = vmax.f32 %v1339_v41, 0.0  ;;  %v3190_v45 = vld [vmem:[%s4359_s13 + $0x20] sm:$0xff]   ;;  %v3192_v46 = vld [vmem:[%s4359_s13 + $0x28] sm:$0xff]  }
 0x601   :  { %v1338_v50 = vmax.f32 %v1245_v47, %v1326_v48  ;;  %v1340_v51 = vmax.f32 %v1337_v44, 0.0 }
 0x602   :  { %v1344_v53 = vpack.c.bf16 %v1342_v49, %v1342_v49 }
 0x603   :  { %v1341_v52 = vmax.f32 %v1338_v50, 0.0 }
 0x604   :  { %v1357_v55 = vand.u32 %v1344_v53, %v4143_v28  ;;  %v3174_v28 = vld [vmem:[%s4355_s9 + $0x10] sm:$0xff]  }
 0x605   :  { %v1343_v54 = vpack.c.bf16 %v1341_v52, %v1340_v51 }
 0x607   :  { %2955 = vmatpush3.bf16.msra.mxu0 %v1343_v54 }
 0x608   :  { %2956 = vmatprep.subr.bf16.mxu0 %v3648_v0 }
 0x60b   :  { %2957 = vmatpush3.bf16.msra.mxu0 %v1357_v55  ;;  %v3651_v55 = vmov 65535  }
 0x60c   :  { %2972 = vmatprep.subr.bf16.mxu0 %v3648_v0 }
 0x60e   :  { %2959 = vmatmul.mubr.msk.bf16.vlgmr.msra.gmra.mrb[44].mxu0 %vm1352_vm9, %v3170_v56  ;;  %v1798_v56 = vsel %vm936_vm7, 4294967295, %v3651_v55 }
 0x60f   :  { %2973 = vmatpush3.bf16.msra.mxu0 %v3171_v57  ;;  %2978 = vmatprep.mubr.msk.bf16.mxu0 %vm3649_vm0, %v3648_v0  ;;  %v1799_v60 = vsel %vm1797_vm11, %v1798_v56, 0 }
 0x610   :  { %2974 = vmatprep.subr.bf16.mxu0 %v3648_v0 }
 0x613   :  { %2975 = vmatpush3.bf16.msra.mxu0 %v3172_v58 }
 0x614   :  { %2976 = vmatprep.subr.bf16.mxu0 %v3648_v0 }
 0x617   :  { %2977 = vmatpush3.bf16.msra.mxu0 %v3174_v28 }
 0x618   :  { %2992 = vmatprep.subr.bf16.mxu0 %v3648_v0 }
 0x6e1   :  { %v1393_v61 = vpop.f32.mrb[44].mxu0 }
 0x6e2   :  { %v2960_v62 = vpop.f32.mrb[45].mxu0 }
 0x6e3   :  { %v1396_v63 = vpop.f32.mrb[46].mxu0 }
 0x6e4   :  { %v1400_v1 = vpack.c.bf16 %v1396_v63, %v1393_v61  ;;  %v2961_v2 = vpop.f32.mrb[47].mxu0  ;;  %v1792_v63 = vld [vmem:[#allocation16] sm:$0xf] }
 0x6e5   :  { %v3189_v2 = vld [vmem:[%s4359_s13 + $0x8] sm:$0xff]  }
 0x6e6   :  { %v1417_v3 = vshll.u32 %v1400_v1, 16  ;;  %2979 = vmatmul.mubr.msk.bf16.vlgmr.msra.gmra.mrb[48].mxu0 %vm1439_vm10, %v1400_v1  ;;  %v1415_v4 = vshrl.u32 %v1400_v1, 16  ;;  %v1553_v10 = vrot.slane %v1400_v1, 1  ;;  %v3188_v1 = vld [vmem:[%s4359_s13] sm:$0xff]  }
 0x6e7   :  { %3000 = vmatprep.mubr.msk.bf16.mxu0 %vm3649_vm0, %v3648_v0  ;;  %2993 = vmatpush3.bf16.msra.mxu0 %v3180_v11 }
 0x6e8   :  { %v1419_v5 = vrot.slane %v1417_v3, 1  ;;  %2994 = vmatprep.subr.bf16.mxu0 %v3648_v0  ;;  %v3191_v3 = vld [vmem:[%s4359_s13 + $0x10] sm:$0xff]  }
 0x6ea   :  { %v1420_v7 = vor.u32 %v1419_v5, %v1415_v4  ;;  %v3193_v4 = vld [vmem:[%s4359_s13 + $0x18] sm:$0xff]   ;;  %v3194_v5 = vld [vmem:[%s4359_s13 + $0x30] sm:$0xff]  }
 0x6eb   :  { %2995 = vmatpush3.bf16.msra.mxu0 %v3182_v13 }
 0x6ec   :  { %2969 = vmatmul.mubr.msk.bf16.vlgmr.msra.gmra.mrb[40].mxu1 %vm1439_vm10, %v1420_v7  ;;  %2996 = vmatprep.subr.bf16.mxu0 %v3648_v0 }
 0x6ed   :  { %2983 = vmatpush3.bf16.msra.mxu1 %v3177_v6  ;;  %2988 = vmatprep.mubr.msk.bf16.mxu1 %vm3649_vm0, %v3648_v0  ;;  %v3195_v6 = vld [vmem:[%s4359_s13 + $0x38] sm:$0xff]  }
 0x6ee   :  { %2984 = vmatprep.subr.bf16.mxu1 %v3648_v0 }
 0x6ef   :  { %2997 = vmatpush3.bf16.msra.mxu0 %v3184_v15  ;;  %v3196_v15 = vld [vmem:[%s4359_s13 + $0x40] sm:$0xff]  }
 0x6f0   :  { %2998 = vmatprep.subr.bf16.mxu0 %v3648_v0 }
 0x6f1   :  { %2985 = vmatpush3.bf16.msra.mxu1 %v3178_v8 }
 0x6f2   :  { %2986 = vmatprep.subr.bf16.mxu1 %v3648_v0 }
 0x6f3   :  { %2999 = vmatpush3.bf16.msra.mxu0 %v3186_v17  ;;  %v3197_v17 = vld [vmem:[%s4359_s13 + $0x48] sm:$0xff]  }
 0x6f4   :  { %3016 = vmatprep.subr.bf16.mxu0 %v3648_v0 }
 0x6f5   :  { %2987 = vmatpush3.bf16.msra.mxu1 %v3179_v9 }
 0x6f6   :  { %3004 = vmatprep.subr.bf16.mxu1 %v3648_v0 }
 0x6f8   :  { %2989 = vmatmul.mubr.msk.bf16.vlgmr.msra.gmra.mrb[44].mxu1 %vm1439_vm10, %v1553_v10 }
 0x6f9   :  { %3012 = vmatprep.mubr.msk.bf16.mxu1 %vm3649_vm0, %v3648_v0  ;;  %3005 = vmatpush3.bf16.msra.mxu1 %v3181_v12 }
 0x6fa   :  { %3006 = vmatprep.subr.bf16.mxu1 %v3648_v0 }
 0x6fd   :  { %3007 = vmatpush3.bf16.msra.mxu1 %v3183_v14 }
 0x6fe   :  { %3008 = vmatprep.subr.bf16.mxu1 %v3648_v0 }
 0x701   :  { %3009 = vmatpush3.bf16.msra.mxu1 %v3185_v16 }
 0x702   :  { %3010 = vmatprep.subr.bf16.mxu1 %v3648_v0 }
 0x705   :  { %3011 = vmatpush3.bf16.msra.mxu1 %v3187_v18  ;;  %v3198_v18 = vld [vmem:[%s4359_s13 + $0x50] sm:$0xff]  }
 0x706   :  { %3022 = vmatprep.subr.bf16.mxu1 %v3648_v0 }
 0x7b9   :  { %v1538_v19 = vpop.f32.mrb[48].mxu0 }
 0x7ba   :  { %v2980_v20 = vpop.f32.mrb[49].mxu0 }
 0x7bb   :  { %v1541_v21 = vpop.f32.mrb[50].mxu0 }
 0x7bc   :  { %v2981_v22 = vpop.f32.mrb[51].mxu0 }
 0x7bd   :  { %v3201_v22 = vld [vmem:[#allocation19 + $0x20] sm:$0xff]  }
 0x7bf   :  { %v1477_v23 = vpop.f32.mrb[40].mxu1 }
 0x7c0   :  { %v1539_v24 = vadd.f32 %v1538_v19, %v1477_v23  ;;  %v2970_v25 = vpop.f32.mrb[41].mxu1  ;;  %v3199_v19 = vld [vmem:[%s4359_s13 + $0x58] sm:$0xff]  }
 0x7c1   :  { %v1480_v26 = vpop.f32.mrb[42].mxu1  ;;  %v3202_v23 = vld [vmem:[#allocation19 + $0x8] sm:$0xff]   ;;  %v3204_v25 = vld [vmem:[#allocation19 + $0x10] sm:$0xff]  }
 0x7c2   :  { %v1542_v27 = vadd.f32 %v1541_v21, %v1480_v26  ;;  %v2971_v29 = vpop.f32.mrb[43].mxu1  ;;  %v3200_v21 = vld [vmem:[#allocation19] sm:$0xff]   ;;  %v3205_v26 = vld [vmem:[#allocation19 + $0x30] sm:$0xff]  }
 0x7c3   :  { %v3207_v29 = vld [vmem:[#allocation19 + $0x38] sm:$0xff]  }
 0x7cb   :  { %v1609_v30 = vpop.f32.mrb[44].mxu1 }
 0x7cc   :  { %v1616_v32 = vadd.f32 %v1609_v30, %v1539_v24  ;;  %v2990_v33 = vpop.f32.mrb[45].mxu1  ;;  %v3203_v24 = vld [vmem:[#allocation19 + $0x28] sm:$0xff]  }
 0x7cd   :  { %v1612_v34 = vpop.f32.mrb[46].mxu1 }
 0x7ce   :  { %v1625_v35 = vadd.f32 %v2613_v31, %v1616_v32  ;;  %v1617_v36 = vadd.f32 %v1612_v34, %v1542_v27  ;;  %v2991_v37 = vpop.f32.mrb[47].mxu1  ;;  %v3206_v27 = vld [vmem:[#allocation19 + $0x18] sm:$0xff]  }
 0x7d0   :  { %v1626_v38 = vadd.f32 %v2613_v31, %v1617_v36  ;;  %v1629_v39 = vrot.slane %v1625_v35, 1 }
 0x7d2   :  { %v1630_v40 = vrot.slane %v1626_v38, 1 }
 0x7d4   :  { %v1631_v41 = vsel %vm487_vm4, %v1629_v39, %v1630_v40  ;;  %v1635_v42 = vmax.f32 %v1626_v38, %v1630_v40  ;;  %v2656_v40 = vld [vmem:[#allocation17] ss:$0 sm:$0xff] }
 0x7d5   :  { %v1634_v43 = vmax.f32 %v1625_v35, %v1631_v41 }
 0x7d7   :  { %v1636_v44 = vpack.c.bf16 %v1635_v42, %v1634_v43 }
 0x7d9   :  { %3001 = vmatmul.mubr.msk.bf16.vlgmr.msra.gmra.mrb[52].mxu0 %vm647_vm5, %v1636_v44  ;;  %3013 = vmatmul.mubr.msk.bf16.vlgmr.msra.gmra.mrb[48].mxu1 %vm647_vm5, %v1636_v44 }
 0x7da   :  { %3018 = vmatprep.mubr.msk.bf16.mxu0 %vm3649_vm0, %v3648_v0  ;;  %3030 = vmatprep.mubr.msk.bf16.mxu1 %vm3649_vm0, %v3648_v0 }
 0x7db   :  { %3023 = vmatpush3.bf16.msra.mxu1 %v3190_v45 }
 0x7dc   :  { %3024 = vmatprep.subr.bf16.mxu1 %v3648_v0 }
 0x7df   :  { %3025 = vmatpush3.bf16.msra.mxu1 %v3192_v46 }
 0x7e0   :  { %3026 = vmatprep.subr.bf16.mxu1 %v3648_v0 }
 0x7e3   :  { %3027 = vmatpush3.bf16.msra.mxu1 %v3194_v5 }
 0x7e4   :  { %3028 = vmatprep.subr.bf16.mxu1 %v3648_v0 }
 0x7e7   :  { %3029 = vmatpush3.bf16.msra.mxu1 %v3195_v6 }
 0x7e8   :  { %3046 = vmatprep.subr.bf16.mxu1 %v3648_v0 }
 0x8ac   :  { %v1706_v47 = vpop.f32.mrb[52].mxu0  ;;  %v1780_v48 = vpop.f32.mrb[48].mxu1 }
 0x8ad   :  { %v1787_v49 = vmax.f32 %v1706_v47, %v1780_v48  ;;  %v3002_v50 = vpop.f32.mrb[53].mxu0  ;;  %v3014_v51 = vpop.f32.mrb[49].mxu1 }
 0x8ae   :  { %v1709_v52 = vpop.f32.mrb[54].mxu0  ;;  %v1783_v53 = vpop.f32.mrb[50].mxu1 }
 0x8af   :  { %v1788_v54 = vmax.f32 %v1709_v52, %v1783_v53  ;;  %v3003_v57 = vpop.f32.mrb[55].mxu0  ;;  %v3015_v58 = vpop.f32.mrb[51].mxu1  ;;  %v1789_v28 = vmax.f32 %v1787_v49, 0.0  ;;  %v2251_v52 = vsel %vm2249_vm13, 4294967295, %v3651_v55  ;;  %v3209_v55 = vld [vmem:[#allocation22 + $0x8] sm:$0xff]  }
 0x8b1   :  { %v1790_v59 = vmax.f32 %v1788_v54, 0.0 }
 0x8b3   :  { %v1791_v61 = vpack.c.bf16 %v1790_v59, %v1789_v28 }
 0x8b5   :  { %v1801_v62 = vand.u32 %v1799_v60, %v1791_v61  ;;  %v2252_v60 = vsel %vm2250_vm14, %v2251_v52, 0 }
 0x8b7   :  { %3017 = vmatpush3.bf16.msra.mxu0 %v1801_v62 }
 0x8b8   :  { %3034 = vmatprep.subr.bf16.mxu0 %v3648_v0 }
 0x8ba   :  { %3019 = vmatmul.mubr.msk.bf16.vlgmr.msra.gmra.mrb[56].mxu0 %vm1793_vm12, %v1792_v63  ;;  %v2244_v63 = vld [vmem:[#allocation20] sm:$0x1] }
 0x8bb   :  { %3035 = vmatpush3.bf16.msra.mxu0 %v3188_v1  ;;  %3042 = vmatprep.mubr.msk.bf16.mxu0 %vm3649_vm0, %v3648_v0  ;;  %v3208_v1 = vld [vmem:[#allocation22] sm:$0xff]  }
 0x8bc   :  { %3036 = vmatprep.subr.bf16.mxu0 %v3648_v0 }
 0x8bf   :  { %3037 = vmatpush3.bf16.msra.mxu0 %v3189_v2 }
 0x8c0   :  { %3038 = vmatprep.subr.bf16.mxu0 %v3648_v0 }
 0x8c3   :  { %3039 = vmatpush3.bf16.msra.mxu0 %v3191_v3 }
 0x8c4   :  { %3040 = vmatprep.subr.bf16.mxu0 %v3648_v0 }
 0x8c7   :  { %3041 = vmatpush3.bf16.msra.mxu0 %v3193_v4 }
 0x8c8   :  { %3058 = vmatprep.subr.bf16.mxu0 %v3648_v0 }
 0x98d   :  { %v1837_v7 = vpop.f32.mrb[56].mxu0 }
 0x98e   :  { %v1843_v8 = vpack.c.bf16 %v1837_v7, %v1837_v7  ;;  %v3020_v9 = vpop.f32.mrb[57].mxu0  ;;  %v3210_v7 = vld [vmem:[%s4365_s19] sm:$0xff]  }
 0x98f   :  { %v1840_v10 = vpop.f32.mrb[58].mxu0  ;;  %v2668_v9 = vld [vmem:[#allocation23] ss:$0 sm:$0xff] }
 0x990   :  { %v1864_v11 = vshll.u32 %v1843_v8, 16  ;;  %v3021_v12 = vpop.f32.mrb[59].mxu0  ;;  %3043 = vmatmul.mubr.msk.bf16.vlgmr.msra.gmra.mrb[60].mxu0 %vm647_vm5, %v1843_v8  ;;  %v1862_v13 = vshrl.u32 %v1843_v8, 16  ;;  %v2011_v20 = vrot.slane %v1843_v8, 1  ;;  %v3211_v8 = vld [vmem:[%s4365_s19 + $0x8] sm:$0xff]   ;;  %s3652_s19 = smov [#allocation29]  }
 0x991   :  { %3066 = vmatprep.mubr.msk.bf16.mxu0 %vm3649_vm0, %v3648_v0  ;;  %3059 = vmatpush3.bf16.msra.mxu0 %v3200_v21  ;;  %s2500_s8 = sshll.u32 %s3652_s19, 4  ;;  %s2501_s8 = int_to_ptr.vmem [resolvable:$true] %s2500_s8 }
 0x992   :  { %v1866_v14 = vrot.slane %v1864_v11, 1  ;;  %3060 = vmatprep.subr.bf16.mxu0 %v3648_v0  ;;  %s3587_s9 = scalar_lea.vmem %s2501_s8, 32  ;;  %p3592_p11 = scmp.lt.s32.totalorder %s2501_s8, %s2501_s8 }
 0x993   :  { %p3588_p10 = scmp.ne.s32.totalorder %s2501_s8, %s3587_s9  ;;  %p3593_p12 = scmp.lt.s32.totalorder %s3587_s9, %s3587_s9 }
 0x994   :  { %v1867_v16 = vor.u32 %v1866_v14, %v1862_v13 }
 0x995   :  { %3061 = vmatpush3.bf16.msra.mxu0 %v3202_v23  ;;  %p3594_p13 = por %p3593_p12, %p3592_p11 }
 0x996   :  { %3031 = vmatmul.mubr.msk.bf16.vlgmr.msra.gmra.mrb[52].mxu1 %vm647_vm5, %v1867_v16  ;;  %3062 = vmatprep.subr.bf16.mxu0 %v3648_v0 }
 0x997   :  { %3047 = vmatpush3.bf16.msra.mxu1 %v3196_v15  ;;  %3054 = vmatprep.mubr.msk.bf16.mxu1 %vm3649_vm0, %v3648_v0  ;;  %p3595_p0 = pnand %p3594_p13, %p3588_p10 }
 0x998   :  { %3048 = vmatprep.subr.bf16.mxu1 %v3648_v0 }
 0x999   :  { %3063 = vmatpush3.bf16.msra.mxu0 %v3204_v25  ;;  %v2676_v25 = vld [vmem:[#allocation28] ss:$0 sm:$0xff] }
 0x99a   :  { %3064 = vmatprep.subr.bf16.mxu0 %v3648_v0 }
 0x99b   :  { %3049 = vmatpush3.bf16.msra.mxu1 %v3197_v17  ;;  %v3212_v17 = vld [vmem:[#allocation26] sm:$0xff]  }
 0x99c   :  { %3050 = vmatprep.subr.bf16.mxu1 %v3648_v0 }
 0x99d   :  { %3065 = vmatpush3.bf16.msra.mxu0 %v3206_v27 }
 0x99e   :  { %3082 = vmatprep.subr.bf16.mxu0 %v3648_v0 }
 0x99f   :  { %3051 = vmatpush3.bf16.msra.mxu1 %v3198_v18  ;;  %v2672_v18 = vld [vmem:[#allocation25] ss:$0 sm:$0xff] }
 0x9a0   :  { %3052 = vmatprep.subr.bf16.mxu1 %v3648_v0 }
 0x9a3   :  { %3053 = vmatpush3.bf16.msra.mxu1 %v3199_v19 }
 0x9a4   :  { %3070 = vmatprep.subr.bf16.mxu1 %v3648_v0 }
 0x9a6   :  { %3055 = vmatmul.mubr.msk.bf16.vlgmr.msra.gmra.mrb[56].mxu1 %vm647_vm5, %v2011_v20 }
 0x9a7   :  { %3078 = vmatprep.mubr.msk.bf16.mxu1 %vm3649_vm0, %v3648_v0  ;;  %3071 = vmatpush3.bf16.msra.mxu1 %v3201_v22 }
 0x9a8   :  { %3072 = vmatprep.subr.bf16.mxu1 %v3648_v0 }
 0x9ab   :  { %3073 = vmatpush3.bf16.msra.mxu1 %v3203_v24 }
 0x9ac   :  { %3074 = vmatprep.subr.bf16.mxu1 %v3648_v0 }
 0x9af   :  { %3075 = vmatpush3.bf16.msra.mxu1 %v3205_v26 }
 0x9b0   :  { %3076 = vmatprep.subr.bf16.mxu1 %v3648_v0 }
 0x9b3   :  { %3077 = vmatpush3.bf16.msra.mxu1 %v3207_v29 }
 0x9b4   :  { %3096 = vmatprep.subr.bf16.mxu1 %v3648_v0 }
 0xa63   :  { %v1995_v30 = vpop.f32.mrb[60].mxu0 }
 0xa64   :  { %v3044_v31 = vpop.f32.mrb[61].mxu0 }
 0xa65   :  { %v1998_v32 = vpop.f32.mrb[62].mxu0 }
 0xa66   :  { %v3045_v33 = vpop.f32.mrb[63].mxu0 }
 0xa69   :  { %v1929_v34 = vpop.f32.mrb[52].mxu1 }
 0xa6a   :  { %v1996_v35 = vadd.f32 %v1995_v30, %v1929_v34  ;;  %v3032_v36 = vpop.f32.mrb[53].mxu1 }
 0xa6b   :  { %v1932_v37 = vpop.f32.mrb[54].mxu1 }
 0xa6c   :  { %v3033_v38 = vpop.f32.mrb[55].mxu1 }
 0xa79   :  { %v2073_v39 = vpop.f32.mrb[56].mxu1 }
 0xa7a   :  { %v2079_v41 = vadd.f32 %v2073_v39, %v1996_v35  ;;  %v3056_v42 = vpop.f32.mrb[57].mxu1 }
 0xa7b   :  { %v2076_v43 = vpop.f32.mrb[58].mxu1 }
 0xa7c   :  { %v2087_v44 = vadd.f32 %v2656_v40, %v2079_v41  ;;  %v3057_v45 = vpop.f32.mrb[59].mxu1 }
 0xa7e   :  { %v2089_v46 = vrot.slane %v2087_v44, 1 }
 0xa80   :  { %v2091_v47 = vmax.f32 %v2087_v44, %v2089_v46 }
 0xa82   :  { %v2092_v48 = vpack.c.bf16 %v2091_v47, %v2091_v47 }
 0xa84   :  { %3067 = vmatmul.mubr.msk.bf16.vlgmr.msra.gmra.mrb[64].mxu0 %vm647_vm5, %v2092_v48  ;;  %3079 = vmatmul.mubr.msk.bf16.vlgmr.msra.gmra.mrb[60].mxu1 %vm647_vm5, %v2092_v48 }
 0xa85   :  { %3084 = vmatprep.mubr.msk.bf16.mxu0 %vm3649_vm0, %v3648_v0  ;;  %3100 = vmatprep.mubr.msk.bf16.mxu1 %vm3649_vm0, %v3648_v0 }
 0xa86   :  { %3097 = vmatpush3.bf16.msra.mxu1 %v3210_v7 }
 0xa87   :  { %3098 = vmatprep.subr.bf16.mxu1 %v3648_v0 }
 0xa8a   :  { %3099 = vmatpush3.bf16.msra.mxu1 %v3211_v8 }
 0xb57   :  { %v2162_v49 = vpop.f32.mrb[64].mxu0  ;;  %v2235_v50 = vpop.f32.mrb[60].mxu1 }
 0xb58   :  { %v2241_v51 = vmax.f32 %v2162_v49, %v2235_v50  ;;  %v3068_v53 = vpop.f32.mrb[65].mxu0  ;;  %v3080_v54 = vpop.f32.mrb[61].mxu1 }
 0xb59   :  { %v2165_v56 = vpop.f32.mrb[66].mxu0  ;;  %v2238_v57 = vpop.f32.mrb[62].mxu1 }
 0xb5a   :  { %v2242_v58 = vmax.f32 %v2241_v51, 0.0  ;;  %v3069_v28 = vpop.f32.mrb[67].mxu0  ;;  %v3081_v59 = vpop.f32.mrb[63].mxu1 }
 0xb5c   :  { %v2243_v61 = vpack.c.bf16 %v2242_v58, %v2242_v58 }
 0xb5e   :  { %v2254_v62 = vand.u32 %v2252_v60, %v2243_v61 }
 0xb60   :  { %3083 = vmatpush3.bf16.msra.mxu0 %v2254_v62 }
 0xb61   :  { %3088 = vmatprep.subr.bf16.mxu0 %v3648_v0 }
 0xb63   :  { %3085 = vmatmul.mubr.msk.bf16.vlgmr.msra.gmra.mrb[68].mxu0 %vm2245_vm15, %v2244_v63 }
 0xb64   :  { %3089 = vmatpush3.bf16.msra.mxu0 %v3208_v1  ;;  %3092 = vmatprep.mubr.msk.bf16.mxu0 %vm3649_vm0, %v3648_v0 }
 0xb65   :  { %3090 = vmatprep.subr.bf16.mxu0 %v3648_v0 }
 0xb68   :  { %3091 = vmatpush3.bf16.msra.mxu0 %v3209_v55 }
 0xb69   :  { %3104 = vmatprep.subr.bf16.mxu0 %v3648_v0 }
 0xc36   :  { %v2290_v2 = vpop.f32.mrb[68].mxu0 }
 0xc37   :  { %v2296_v3 = vpack.c.bf16 %v2290_v2, %v2290_v2  ;;  %v3086_v4 = vpop.f32.mrb[69].mxu0 }
 0xc38   :  { %v2293_v5 = vpop.f32.mrb[70].mxu0 }
 0xc39   :  { %v3087_v6 = vpop.f32.mrb[71].mxu0  ;;  %3093 = vmatmul.mubr.msk.bf16.vlgmr.msra.gmra.mrb[72].mxu0 %vm2320_vm1, %v2296_v3 }
 0xc3a   :  { %3106 = vmatprep.mubr.msk.bf16.mxu0 %vm3649_vm0, %v3648_v0  ;;  %3105 = vmatpush3.bf16.msra.mxu0 %v3212_v17  ;;  %vm2449_vm0 = vcmask 130048  }
 0xd0c   :  { %v2358_v10 = vpop.f32.mrb[72].mxu0 }
 0xd0d   :  { %v2359_v11 = vadd.f32 %v2668_v9, %v2358_v10  ;;  %v3094_v12 = vpop.f32.mrb[73].mxu0 }
 0xd0e   :  { %v2361_v13 = vpop.f32.mrb[74].mxu0 }
 0xd0f   :  { %v2364_v14 = vmax.f32 %v2359_v11, 0.0  ;;  %v3095_v15 = vpop.f32.mrb[75].mxu0 }
 0xd11   :  { %v2365_v16 = vpack.c.bf16 %v2364_v14, %v2364_v14 }
 0xd13   :  { %3101 = vmatmul.mubr.msk.bf16.vlgmr.msra.gmra.mrb[64].mxu1 %vm2320_vm1, %v2365_v16 }
 0xde6   :  { %v2426_v19 = vpop.f32.mrb[64].mxu1 }
 0xde7   :  { %v2427_v0 = vadd.f32 %v2672_v18, %v2426_v19  ;;  %v3102_v20 = vpop.f32.mrb[65].mxu1 }
 0xde8   :  { %v2429_v21 = vpop.f32.mrb[66].mxu1 }
 0xde9   :  { %v2432_v22 = vmax.f32 %v2427_v0, 0.0  ;;  %v3103_v23 = vpop.f32.mrb[67].mxu1 }
 0xdeb   :  { %v2433_v24 = vpack.c.bf16 %v2432_v22, %v2432_v22 }
 0xded   :  { %3107 = vmatmul.mubr.msk.bf16.vlgmr.msra.gmra.mrb[76].mxu0 %vm2449_vm0, %v2433_v24 }
 0xec0   :  { %v2487_v26 = vpop.f32.mrb[76].mxu0 }
 0xec1   :  { %v2488_v27 = vadd.f32 %v2676_v25, %v2487_v26  ;;  %v3108_v29 = vpop.f32.mrb[77].mxu0 }
 0xec2   :  { %v2490_v30 = vpop.f32.mrb[78].mxu0 }
 0xec3   :  { %2493 = vst [vmem:[#allocation29] sm:$0x3] %v2488_v27  ;;  %v3109_v31 = vpop.f32.mrb[79].mxu0 }
 0xec4   :  { %3598 = shalt.err (!%p3595_p0)
}
 0xec5   :  { %s3599_s15 = scalar_lea.hbm %s4369_s23, 32 }
 0xec6   :  { %p3600_p1 = scmp.ne.s32.totalorder %s4369_s23, %s3599_s15  ;;  %p3603_p2 = scmp.lt.u32.totalorder %s3599_s15, %s4369_s23 }
 0xec8   :  { %p3605_p3 = pnand %p3603_p2, %p3600_p1 }
 0xeca   :  { %3608 = shalt.err (!%p3605_p3)
}
 0xecb   :  { %2503 = dma.vmem_to_hbm [thread:$0]  %s2501_s8, 32, %s4369_s23, [#allocation4]  }
 0xecc   :  { %3627 = dma.done.wait [#allocation4], 32  }
 0xecd   :  { %3628 = vsyncadd [#allocation4], 4294967264 }
 0xece   :  { %2507 = vsyncpa [#allocation3], 1 }
 0xecf   :  { %2508 = vsyncpa [#allocation6], 1 }
 0xed0   :  { %2509 = vsyncpa [#allocation9], 1 }
 0xed1   :  { %2510 = vsyncpa [#allocation12], 1 }
 0xed2   :  { %2511 = vsyncpa [#allocation15], 1 }
 0xed3   :  { %2512 = vsyncpa [#allocation18], 1 }
 0xed4   :  { %2513 = vsyncpa [#allocation21], 1 }
 0xed5   :  { %2514 = vsyncpa [#allocation24], 1 }
 0xed6   :  { %2515 = vsyncpa [#allocation27], 1 }
 0xed7   :  { %2516 = vsyncpa [#allocation4], 1 }

</bundles_post_ra>
